<compile_context>
chip_gen: v6e
topology: v6e:2x2x1
jax: 0.10.0
libtpu: 0.0.40
codegen_flags: <defaults>
</compile_context>

<pallas_src>
import jax
import jax.numpy as jnp
from jax import lax
from jax.experimental import pallas as pl
from jax.experimental.pallas import tpu as pltpu


def _round_up(v, m):
    return ((v + m - 1) // m) * m


def down_pallas(x_nchw, w1, b1, w2, b2):
    """UNet Down block: MaxPool2d(2) -> Conv3x3(p=1) -> ReLU -> Conv3x3(p=1) -> ReLU.

    x_nchw : (N, Cin, H, W) float32 (PyTorch layout)
    w1     : (Cmid, Cin, 3, 3)  PyTorch OIHW ; b1 : (Cmid,)
    w2     : (Cout, Cmid, 3, 3)               ; b2 : (Cout,)
    returns (N, Cout, H//2, W//2) float32 (NCHW)
    """
    N, Cin, H, W = x_nchw.shape
    assert H % 2 == 0 and W % 2 == 0
    Hp, Wp = H // 2, W // 2
    HpWp = Hp * Wp
    Cmid = w1.shape[0]
    Cout = w2.shape[0]

    # Flat (row-major) padded-plane geometry: interior rows [IS0, IS0 + Hp*Wp),
    # one pooled-row (Wp) halo above/below plus +-1 slack so every 3x3 tap is a
    # single contiguous sublane slice of length Hp*Wp.
    IS0 = Wp + 1
    PAD_LEN = HpWp + 2 * Wp + 2

    # ---- wrapper-side layout glue (pure XLA reshape/transpose) ---------------
    # Pre-split the 2x2 pooling-window parities into leading axes.
    xf = jnp.transpose(x_nchw, (0, 2, 3, 1)).astype(jnp.float32)          # NHWC
    xf = xf.reshape(N, Hp, 2, Wp, 2, Cin)
    xf = jnp.transpose(xf, (0, 2, 4, 1, 3, 5)).reshape(N, 2, 2, HpWp, Cin)

    w1_hwio = jnp.transpose(w1, (2, 3, 1, 0)).astype(jnp.bfloat16)        # (3,3,Cin,Cmid)
    w2_hwio = jnp.transpose(w2, (2, 3, 1, 0)).astype(jnp.bfloat16)        # (3,3,Cmid,Cout)
    b1_row = b1.reshape(1, Cmid).astype(jnp.float32)
    b2_row = b2.reshape(1, Cout).astype(jnp.float32)

    def kernel(x_ref, w1_ref, b1_ref, w2_ref, b2_ref, out_ref, pad1_ref, pad2_ref):
        f32 = jnp.float32

        # -------- 2x2 max pool, stride 2 : exact, VPU-only --------------------
        pooled = jnp.maximum(
            jnp.maximum(x_ref[0, 0, 0], x_ref[0, 0, 1]),
            jnp.maximum(x_ref[0, 1, 0], x_ref[0, 1, 1]))                  # (HpWp, Cin)

        # -------- halo-only zeroing (O(Wp) rows, not O(H*W)) ------------------
        pad1_ref[pl.ds(0, IS0), :] = jnp.zeros((IS0, Cin), f32)
        pad1_ref[pl.ds(IS0 + HpWp, Wp + 1), :] = jnp.zeros((Wp + 1, Cin), f32)
        pad2_ref[pl.ds(0, IS0), :] = jnp.zeros((IS0, Cmid), f32)
        pad2_ref[pl.ds(IS0 + HpWp, Wp + 1), :] = jnp.zeros((Wp + 1, Cmid), f32)
        pad1_ref[pl.ds(IS0, HpWp), :] = pooled

        # Column-validity masks for the dx = -1 / +1 tap groups (the flat layout
        # wraps those taps across image rows; the mask depends only on dx, so it
        # can be applied to the per-group matmul result: 2 selects per conv).
        col = lax.broadcasted_iota(jnp.int32, (HpWp, 1), 0) % Wp
        keep_l = col > 0            # dx = -1 : output column w == 0 is invalid
        keep_r = col < (Wp - 1)     # dx = +1 : output column w == Wp-1 is invalid

        def conv3x3(src_ref, w_ref, n_out):
            """3x3 pad=1 conv over the whole plane: 9 MXU dots, bf16 in / f32 acc."""
            def dx_group(dx):
                acc = jnp.zeros((HpWp, n_out), f32)
                for ky in range(3):
                    start = IS0 + (ky - 1) * Wp + dx
                    tap = src_ref[pl.ds(start, HpWp), :].astype(jnp.bfloat16)
                    acc = acc + jnp.dot(tap, w_ref[ky, dx + 1],
                                        preferred_element_type=f32)
                return acc
            return (dx_group(0)
                    + jnp.where(keep_l, dx_group(-1), 0.0)
                    + jnp.where(keep_r, dx_group(1), 0.0))

        # -------- conv1 + bias + ReLU (bias broadcast hoisted, no row loops) --
        h1 = jnp.maximum(conv3x3(pad1_ref, w1_ref, Cmid) + b1_ref[...], 0.0)
        pad2_ref[pl.ds(IS0, HpWp), :] = h1

        # -------- conv2 + bias + ReLU -----------------------------------------
        h2 = jnp.maximum(conv3x3(pad2_ref, w2_ref, Cout) + b2_ref[...], 0.0)
        # TODO(synk): for channel counts < 128 a channel-major (Cout, Hp*Wp)
        # store would be fully lane-dense; at real UNet widths (64..512 ch) this
        # NHWC store already fills the lanes, so we keep the relayout-free form.
        out_ref[0] = h2                                                   # (HpWp, Cout)

    # ---- explicit VMEM budget (double-buffered blocks + scratch + headroom) --
    in_blk = 2 * 2 * _round_up(HpWp, 8) * _round_up(Cin, 128) * 4
    out_blk = _round_up(HpWp, 8) * _round_up(Cout, 128) * 4
    w_blk = 9 * (_round_up(Cin, 16) * _round_up(Cmid, 128)
                 + _round_up(Cmid, 16) * _round_up(Cout, 128)) * 2
    b_blk = (8 * _round_up(Cmid, 128) + 8 * _round_up(Cout, 128)) * 4
    scratch = _round_up(PAD_LEN, 8) * (_round_up(Cin, 128) + _round_up(Cmid, 128)) * 4
    vmem_limit = 2 * (in_blk + out_blk + w_blk + b_blk) + scratch + (8 << 20)
    vmem_limit = int(min(max(vmem_limit, 32 << 20), 64 << 20))  # v7x physical ceiling

    out_flat = pl.pallas_call(
        kernel,
        out_shape=jax.ShapeDtypeStruct((N, HpWp, Cout), jnp.float32),
        grid=(N,),
        in_specs=[
            pl.BlockSpec((1, 2, 2, HpWp, Cin), lambda n: (n, 0, 0, 0, 0)),
            pl.BlockSpec((3, 3, Cin, Cmid), lambda n: (0, 0, 0, 0)),
            pl.BlockSpec((1, Cmid), lambda n: (0, 0)),
            pl.BlockSpec((3, 3, Cmid, Cout), lambda n: (0, 0, 0, 0)),
            pl.BlockSpec((1, Cout), lambda n: (0, 0)),
        ],
        out_specs=pl.BlockSpec((1, HpWp, Cout), lambda n: (n, 0, 0)),
        scratch_shapes=[
            pltpu.VMEM((PAD_LEN, Cin), jnp.float32),
            pltpu.VMEM((PAD_LEN, Cmid), jnp.float32),
        ],
        compiler_params=pltpu.CompilerParams(
            dimension_semantics=("parallel",),
            vmem_limit_bytes=vmem_limit,
        ),
    )(xf, w1_hwio, b1_row, w2_hwio, b2_row)
    # TODO(synk): for production spatial sizes add a second "parallel" grid axis
    # tiling Hp into row strips (1-row halo) so v7x's two TensorCores get more
    # than N parallel steps and the per-step footprint stays well under 64 MiB.

    return jnp.transpose(out_flat.reshape(N, Hp, Wp, Cout), (0, 3, 1, 2))


def down_reference(x_nchw, w1, b1, w2, b2):
    """Pure-JAX reference with matching bf16-operand / f32-accumulate numerics."""
    x = jnp.transpose(x_nchw, (0, 2, 3, 1)).astype(jnp.float32)
    pooled = lax.reduce_window(x, -jnp.inf, lax.max,
                               (1, 2, 2, 1), (1, 2, 2, 1), "VALID")

    def conv_relu(h, w, b):
        h_q = h.astype(jnp.bfloat16).astype(jnp.float32)
        w_q = jnp.transpose(w, (2, 3, 1, 0)).astype(jnp.bfloat16).astype(jnp.float32)
        y = lax.conv_general_dilated(
            h_q, w_q, window_strides=(1, 1), padding="SAME",
            dimension_numbers=("NHWC", "HWIO", "NHWC"),
            precision=lax.Precision.HIGHEST)
        return jnp.maximum(y + b[None, None, None, :].astype(jnp.float32), 0.0)

    y = conv_relu(pooled, w1, b1)
    y = conv_relu(y, w2, b2)
    return jnp.transpose(y, (0, 3, 1, 2))


if __name__ == "__main__":
    # Down(in_channels=4, out_channels=8) on a (2, 4, 16, 16) input.
    N, Cin, H, W = 2, 4, 16, 16
    Cout = 8

    key = jax.random.PRNGKey(0)
    kx, k1, k2, k3, k4 = jax.random.split(key, 5)
    x = jax.random.normal(kx, (N, Cin, H, W), dtype=jnp.float32)
    # deterministic synthetic parameters (PyTorch OIHW layout for conv weights)
    w1 = 0.2 * jax.random.normal(k1, (Cout, Cin, 3, 3), dtype=jnp.float32)
    b1 = 0.1 * jax.random.normal(k2, (Cout,), dtype=jnp.float32)
    w2 = 0.2 * jax.random.normal(k3, (Cout, Cout, 3, 3), dtype=jnp.float32)
    b2 = 0.1 * jax.random.normal(k4, (Cout,), dtype=jnp.float32)

    out = jax.block_until_ready(down_pallas(x, w1, b1, w2, b2))
    ref = jax.block_until_ready(down_reference(x, w1, b1, w2, b2))

    assert out.shape == (N, Cout, H // 2, W // 2), out.shape
    max_err = float(jnp.max(jnp.abs(out - ref)))
    assert jnp.allclose(out, ref, atol=1e-2, rtol=1e-2), max_err

    print("KERNEL_OK")
</pallas_src>

<mosaic_0001>
module attributes {stable_mosaic.version = 11 : i64} {
  func.func @kernel(%arg0: i32, %arg1: memref<1x2x2x64x4xf32, #tpu.memory_space<vmem>>, %arg2: memref<3x3x4x8xbf16, #tpu.memory_space<vmem>>, %arg3: memref<1x8xf32, #tpu.memory_space<vmem>>, %arg4: memref<3x3x8x8xbf16, #tpu.memory_space<vmem>>, %arg5: memref<1x8xf32, #tpu.memory_space<vmem>>, %arg6: memref<1x64x8xf32, #tpu.memory_space<vmem>>, %arg7: memref<82x4xf32, #tpu.memory_space<vmem>>, %arg8: memref<82x8xf32, #tpu.memory_space<vmem>>) attributes {dimension_semantics = [#tpu.dimension_semantics<parallel>], iteration_bounds = array<i64: 2>, scalar_prefetch = 0 : i64, scratch_operands = 2 : i64, tpu.core_type = #tpu.core_type<tc>, window_params = [{transform_indices = @transform_0, window_bounds = array<i64: 1, 2, 2, 64, 4>}, {pipeline_mode = #tpu.pipeline_mode<synchronous>, transform_indices = @transform_1, window_bounds = array<i64: 3, 3, 4, 8>}, {pipeline_mode = #tpu.pipeline_mode<synchronous>, transform_indices = @transform_2, window_bounds = array<i64: 1, 8>}, {pipeline_mode = #tpu.pipeline_mode<synchronous>, transform_indices = @transform_3, window_bounds = array<i64: 3, 3, 8, 8>}, {pipeline_mode = #tpu.pipeline_mode<synchronous>, transform_indices = @transform_4, window_bounds = array<i64: 1, 8>}, {transform_indices = @transform_5, window_bounds = array<i64: 1, 64, 8>}]} {
    %c0 = arith.constant 0 : index
    %c0_0 = arith.constant 0 : index
    %c0_1 = arith.constant 0 : index
    %c0_2 = arith.constant 0 : index
    %c0_3 = arith.constant 0 : index
    %0 = vector.load %arg1[%c0, %c0_0, %c0_1, %c0_2, %c0_3] : memref<1x2x2x64x4xf32, #tpu.memory_space<vmem>>, vector<1x1x1x64x4xf32>
    %1 = vector.shape_cast %0 : vector<1x1x1x64x4xf32> to vector<64x4xf32>
    %c0_4 = arith.constant 0 : index
    %c0_5 = arith.constant 0 : index
    %c1 = arith.constant 1 : index
    %c0_6 = arith.constant 0 : index
    %c0_7 = arith.constant 0 : index
    %2 = vector.load %arg1[%c0_4, %c0_5, %c1, %c0_6, %c0_7] : memref<1x2x2x64x4xf32, #tpu.memory_space<vmem>>, vector<1x1x1x64x4xf32>
    %3 = vector.shape_cast %2 : vector<1x1x1x64x4xf32> to vector<64x4xf32>
    %4 = arith.maximumf %1, %3 : vector<64x4xf32>
    %c0_8 = arith.constant 0 : index
    %c1_9 = arith.constant 1 : index
    %c0_10 = arith.constant 0 : index
    %c0_11 = arith.constant 0 : index
    %c0_12 = arith.constant 0 : index
    %5 = vector.load %arg1[%c0_8, %c1_9, %c0_10, %c0_11, %c0_12] : memref<1x2x2x64x4xf32, #tpu.memory_space<vmem>>, vector<1x1x1x64x4xf32>
    %6 = vector.shape_cast %5 : vector<1x1x1x64x4xf32> to vector<64x4xf32>
    %c0_13 = arith.constant 0 : index
    %c1_14 = arith.constant 1 : index
    %c1_15 = arith.constant 1 : index
    %c0_16 = arith.constant 0 : index
    %c0_17 = arith.constant 0 : index
    %7 = vector.load %arg1[%c0_13, %c1_14, %c1_15, %c0_16, %c0_17] : memref<1x2x2x64x4xf32, #tpu.memory_space<vmem>>, vector<1x1x1x64x4xf32>
    %8 = vector.shape_cast %7 : vector<1x1x1x64x4xf32> to vector<64x4xf32>
    %9 = arith.maximumf %6, %8 : vector<64x4xf32>
    %10 = arith.maximumf %4, %9 : vector<64x4xf32>
    %cst = arith.constant 0.000000e+00 : f32
    %11 = vector.broadcast %cst : f32 to vector<9x4xf32>
    %c0_18 = arith.constant 0 : index
    %c0_19 = arith.constant 0 : index
    %12 = vector.load %arg7[%c0_18, %c0_19] : memref<82x4xf32, #tpu.memory_space<vmem>>, vector<9x4xf32>
    tpu.vector_store %arg7[%c0_18, %c0_19], %11 {strides = array<i32>} : memref<82x4xf32, #tpu.memory_space<vmem>>, vector<9x4xf32>,
    %cst_20 = arith.constant 0.000000e+00 : f32
    %13 = vector.broadcast %cst_20 : f32 to vector<9x4xf32>
    %c73 = arith.constant 73 : index
    %c0_21 = arith.constant 0 : index
    %14 = vector.load %arg7[%c73, %c0_21] : memref<82x4xf32, #tpu.memory_space<vmem>>, vector<9x4xf32>
    tpu.vector_store %arg7[%c73, %c0_21], %13 {strides = array<i32>} : memref<82x4xf32, #tpu.memory_space<vmem>>, vector<9x4xf32>,
    %cst_22 = arith.constant 0.000000e+00 : f32
    %15 = vector.broadcast %cst_22 : f32 to vector<9x8xf32>
    %c0_23 = arith.constant 0 : index
    %c0_24 = arith.constant 0 : index
    %16 = vector.load %arg8[%c0_23, %c0_24] : memref<82x8xf32, #tpu.memory_space<vmem>>, vector<9x8xf32>
    tpu.vector_store %arg8[%c0_23, %c0_24], %15 {strides = array<i32>} : memref<82x8xf32, #tpu.memory_space<vmem>>, vector<9x8xf32>,
    %cst_25 = arith.constant 0.000000e+00 : f32
    %17 = vector.broadcast %cst_25 : f32 to vector<9x8xf32>
    %c73_26 = arith.constant 73 : index
    %c0_27 = arith.constant 0 : index
    %18 = vector.load %arg8[%c73_26, %c0_27] : memref<82x8xf32, #tpu.memory_space<vmem>>, vector<9x8xf32>
    tpu.vector_store %arg8[%c73_26, %c0_27], %17 {strides = array<i32>} : memref<82x8xf32, #tpu.memory_space<vmem>>, vector<9x8xf32>,
    %c9 = arith.constant 9 : index
    %c0_28 = arith.constant 0 : index
    %19 = vector.load %arg7[%c9, %c0_28] : memref<82x4xf32, #tpu.memory_space<vmem>>, vector<64x4xf32>
    tpu.vector_store %arg7[%c9, %c0_28], %10 {strides = array<i32>} : memref<82x4xf32, #tpu.memory_space<vmem>>, vector<64x4xf32>,
    %20 = tpu.iota {dimensions = array<i32: 0>} : vector<64x1xi32>
    %c8_i32 = arith.constant 8 : i32
    %c0_i32 = arith.constant 0 : i32
    %21 = arith.cmpi eq, %c8_i32, %c0_i32 : i32
    %c1_i32 = arith.constant 1 : i32
    %22 = arith.select %21, %c1_i32, %c8_i32 : i32
    %23 = vector.broadcast %22 : i32 to vector<64x1xi32>
    %24 = arith.remsi %20, %23 : vector<64x1xi32>
    %c0_i32_29 = arith.constant 0 : i32
    %25 = vector.broadcast %c0_i32_29 : i32 to vector<64x1xi32>
    %26 = arith.cmpi ne, %24, %25 : vector<64x1xi32>
    %c0_i32_30 = arith.constant 0 : i32
    %27 = vector.broadcast %c0_i32_30 : i32 to vector<64x1xi32>
    %28 = arith.cmpi slt, %24, %27 : vector<64x1xi32>
    %c0_i32_31 = arith.constant 0 : i32
    %29 = arith.cmpi slt, %22, %c0_i32_31 : i32
    %30 = vector.broadcast %29 : i1 to vector<64x1xi1>
    %31 = vector.broadcast %30 : vector<64x1xi1> to vector<64x1xi1>
    %32 = arith.xori %28, %31 : vector<64x1xi1>
    %33 = arith.andi %32, %26 : vector<64x1xi1>
    %34 = vector.broadcast %22 : i32 to vector<64x1xi32>
    %35 = arith.addi %24, %34 : vector<64x1xi32>
    %36 = arith.select %33, %35, %24 : vector<64x1xi1>, vector<64x1xi32>
    %c0_i32_32 = arith.constant 0 : i32
    %37 = vector.broadcast %c0_i32_32 : i32 to vector<64x1xi32>
    %38 = arith.cmpi sgt, %36, %37 : vector<64x1xi32>
    %c7_i32 = arith.constant 7 : i32
    %39 = vector.broadcast %c7_i32 : i32 to vector<64x1xi32>
    %40 = arith.cmpi slt, %36, %39 : vector<64x1xi32>
    %cst_33 = arith.constant 0.000000e+00 : f32
    %41 = vector.broadcast %cst_33 : f32 to vector<64x8xf32>
    %c1_34 = arith.constant 1 : index
    %c0_35 = arith.constant 0 : index
    %42 = vector.load %arg7[%c1_34, %c0_35] : memref<82x4xf32, #tpu.memory_space<vmem>>, vector<64x4xf32>
    %43 = arith.truncf %42 : vector<64x4xf32> to vector<64x4xbf16>
    %c0_36 = arith.constant 0 : index
    %c1_37 = arith.constant 1 : index
    %c0_38 = arith.constant 0 : index
    %c0_39 = arith.constant 0 : index
    %44 = vector.load %arg2[%c0_36, %c1_37, %c0_38, %c0_39] : memref<3x3x4x8xbf16, #tpu.memory_space<vmem>>, vector<1x1x4x8xbf16>
    %45 = vector.shape_cast %44 : vector<1x1x4x8xbf16> to vector<4x8xbf16>
    %cst_40 = arith.constant dense<0.000000e+00> : vector<64x8xf32>
    %46 = tpu.matmul %43, %45, %cst_40 {dimension_numbers = #tpu.dot_dimension_numbers<[1], [0], [0], [1], [0, 0, 1, 1], [], []>} : vector<64x4xbf16>, vector<4x8xbf16>, vector<64x8xf32> -> vector<64x8xf32>
    %47 = arith.addf %41, %46 : vector<64x8xf32>
    %c9_41 = arith.constant 9 : index
    %c0_42 = arith.constant 0 : index
    %48 = vector.load %arg7[%c9_41, %c0_42] : memref<82x4xf32, #tpu.memory_space<vmem>>, vector<64x4xf32>
    %49 = arith.truncf %48 : vector<64x4xf32> to vector<64x4xbf16>
    %c1_43 = arith.constant 1 : index
    %c1_44 = arith.constant 1 : index
    %c0_45 = arith.constant 0 : index
    %c0_46 = arith.constant 0 : index
    %50 = vector.load %arg2[%c1_43, %c1_44, %c0_45, %c0_46] : memref<3x3x4x8xbf16, #tpu.memory_space<vmem>>, vector<1x1x4x8xbf16>
    %51 = vector.shape_cast %50 : vector<1x1x4x8xbf16> to vector<4x8xbf16>
    %cst_47 = arith.constant dense<0.000000e+00> : vector<64x8xf32>
    %52 = tpu.matmul %49, %51, %cst_47 {dimension_numbers = #tpu.dot_dimension_numbers<[1], [0], [0], [1], [0, 0, 1, 1], [], []>} : vector<64x4xbf16>, vector<4x8xbf16>, vector<64x8xf32> -> vector<64x8xf32>
    %53 = arith.addf %47, %52 : vector<64x8xf32>
    %c17 = arith.constant 17 : index
    %c0_48 = arith.constant 0 : index
    %54 = vector.load %arg7[%c17, %c0_48] : memref<82x4xf32, #tpu.memory_space<vmem>>, vector<64x4xf32>
    %55 = arith.truncf %54 : vector<64x4xf32> to vector<64x4xbf16>
    %c2 = arith.constant 2 : index
    %c1_49 = arith.constant 1 : index
    %c0_50 = arith.constant 0 : index
    %c0_51 = arith.constant 0 : index
    %56 = vector.load %arg2[%c2, %c1_49, %c0_50, %c0_51] : memref<3x3x4x8xbf16, #tpu.memory_space<vmem>>, vector<1x1x4x8xbf16>
    %57 = vector.shape_cast %56 : vector<1x1x4x8xbf16> to vector<4x8xbf16>
    %cst_52 = arith.constant dense<0.000000e+00> : vector<64x8xf32>
    %58 = tpu.matmul %55, %57, %cst_52 {dimension_numbers = #tpu.dot_dimension_numbers<[1], [0], [0], [1], [0, 0, 1, 1], [], []>} : vector<64x4xbf16>, vector<4x8xbf16>, vector<64x8xf32> -> vector<64x8xf32>
    %59 = arith.addf %53, %58 : vector<64x8xf32>
    %cst_53 = arith.constant 0.000000e+00 : f32
    %60 = vector.broadcast %cst_53 : f32 to vector<64x8xf32>
    %c0_54 = arith.constant 0 : index
    %c0_55 = arith.constant 0 : index
    %61 = vector.load %arg7[%c0_54, %c0_55] : memref<82x4xf32, #tpu.memory_space<vmem>>, vector<64x4xf32>
    %62 = arith.truncf %61 : vector<64x4xf32> to vector<64x4xbf16>
    %c0_56 = arith.constant 0 : index
    %c0_57 = arith.constant 0 : index
    %c0_58 = arith.constant 0 : index
    %c0_59 = arith.constant 0 : index
    %63 = vector.load %arg2[%c0_56, %c0_57, %c0_58, %c0_59] : memref<3x3x4x8xbf16, #tpu.memory_space<vmem>>, vector<1x1x4x8xbf16>
    %64 = vector.shape_cast %63 : vector<1x1x4x8xbf16> to vector<4x8xbf16>
    %cst_60 = arith.constant dense<0.000000e+00> : vector<64x8xf32>
    %65 = tpu.matmul %62, %64, %cst_60 {dimension_numbers = #tpu.dot_dimension_numbers<[1], [0], [0], [1], [0, 0, 1, 1], [], []>} : vector<64x4xbf16>, vector<4x8xbf16>, vector<64x8xf32> -> vector<64x8xf32>
    %66 = arith.addf %60, %65 : vector<64x8xf32>
    %c8 = arith.constant 8 : index
    %c0_61 = arith.constant 0 : index
    %67 = vector.load %arg7[%c8, %c0_61] : memref<82x4xf32, #tpu.memory_space<vmem>>, vector<64x4xf32>
    %68 = arith.truncf %67 : vector<64x4xf32> to vector<64x4xbf16>
    %c1_62 = arith.constant 1 : index
    %c0_63 = arith.constant 0 : index
    %c0_64 = arith.constant 0 : index
    %c0_65 = arith.constant 0 : index
    %69 = vector.load %arg2[%c1_62, %c0_63, %c0_64, %c0_65] : memref<3x3x4x8xbf16, #tpu.memory_space<vmem>>, vector<1x1x4x8xbf16>
    %70 = vector.shape_cast %69 : vector<1x1x4x8xbf16> to vector<4x8xbf16>
    %cst_66 = arith.constant dense<0.000000e+00> : vector<64x8xf32>
    %71 = tpu.matmul %68, %70, %cst_66 {dimension_numbers = #tpu.dot_dimension_numbers<[1], [0], [0], [1], [0, 0, 1, 1], [], []>} : vector<64x4xbf16>, vector<4x8xbf16>, vector<64x8xf32> -> vector<64x8xf32>
    %72 = arith.addf %66, %71 : vector<64x8xf32>
    %c16 = arith.constant 16 : index
    %c0_67 = arith.constant 0 : index
    %73 = vector.load %arg7[%c16, %c0_67] : memref<82x4xf32, #tpu.memory_space<vmem>>, vector<64x4xf32>
    %74 = arith.truncf %73 : vector<64x4xf32> to vector<64x4xbf16>
    %c2_68 = arith.constant 2 : index
    %c0_69 = arith.constant 0 : index
    %c0_70 = arith.constant 0 : index
    %c0_71 = arith.constant 0 : index
    %75 = vector.load %arg2[%c2_68, %c0_69, %c0_70, %c0_71] : memref<3x3x4x8xbf16, #tpu.memory_space<vmem>>, vector<1x1x4x8xbf16>
    %76 = vector.shape_cast %75 : vector<1x1x4x8xbf16> to vector<4x8xbf16>
    %cst_72 = arith.constant dense<0.000000e+00> : vector<64x8xf32>
    %77 = tpu.matmul %74, %76, %cst_72 {dimension_numbers = #tpu.dot_dimension_numbers<[1], [0], [0], [1], [0, 0, 1, 1], [], []>} : vector<64x4xbf16>, vector<4x8xbf16>, vector<64x8xf32> -> vector<64x8xf32>
    %78 = arith.addf %72, %77 : vector<64x8xf32>
    %cst_73 = arith.constant 0.000000e+00 : f32
    %79 = vector.shape_cast %38 : vector<64x1xi1> to vector<64x1xi1>
    %80 = vector.broadcast %79 : vector<64x1xi1> to vector<64x8xi1>
    %81 = vector.broadcast %cst_73 : f32 to vector<64x8xf32>
    %82 = arith.select %80, %78, %81 : vector<64x8xi1>, vector<64x8xf32>
    %83 = arith.addf %59, %82 : vector<64x8xf32>
    %cst_74 = arith.constant 0.000000e+00 : f32
    %84 = vector.broadcast %cst_74 : f32 to vector<64x8xf32>
    %c2_75 = arith.constant 2 : index
    %c0_76 = arith.constant 0 : index
    %85 = vector.load %arg7[%c2_75, %c0_76] : memref<82x4xf32, #tpu.memory_space<vmem>>, vector<64x4xf32>
    %86 = arith.truncf %85 : vector<64x4xf32> to vector<64x4xbf16>
    %c0_77 = arith.constant 0 : index
    %c2_78 = arith.constant 2 : index
    %c0_79 = arith.constant 0 : index
    %c0_80 = arith.constant 0 : index
    %87 = vector.load %arg2[%c0_77, %c2_78, %c0_79, %c0_80] : memref<3x3x4x8xbf16, #tpu.memory_space<vmem>>, vector<1x1x4x8xbf16>
    %88 = vector.shape_cast %87 : vector<1x1x4x8xbf16> to vector<4x8xbf16>
    %cst_81 = arith.constant dense<0.000000e+00> : vector<64x8xf32>
    %89 = tpu.matmul %86, %88, %cst_81 {dimension_numbers = #tpu.dot_dimension_numbers<[1], [0], [0], [1], [0, 0, 1, 1], [], []>} : vector<64x4xbf16>, vector<4x8xbf16>, vector<64x8xf32> -> vector<64x8xf32>
    %90 = arith.addf %84, %89 : vector<64x8xf32>
    %c10 = arith.constant 10 : index
    %c0_82 = arith.constant 0 : index
    %91 = vector.load %arg7[%c10, %c0_82] : memref<82x4xf32, #tpu.memory_space<vmem>>, vector<64x4xf32>
    %92 = arith.truncf %91 : vector<64x4xf32> to vector<64x4xbf16>
    %c1_83 = arith.constant 1 : index
    %c2_84 = arith.constant 2 : index
    %c0_85 = arith.constant 0 : index
    %c0_86 = arith.constant 0 : index
    %93 = vector.load %arg2[%c1_83, %c2_84, %c0_85, %c0_86] : memref<3x3x4x8xbf16, #tpu.memory_space<vmem>>, vector<1x1x4x8xbf16>
    %94 = vector.shape_cast %93 : vector<1x1x4x8xbf16> to vector<4x8xbf16>
    %cst_87 = arith.constant dense<0.000000e+00> : vector<64x8xf32>
    %95 = tpu.matmul %92, %94, %cst_87 {dimension_numbers = #tpu.dot_dimension_numbers<[1], [0], [0], [1], [0, 0, 1, 1], [], []>} : vector<64x4xbf16>, vector<4x8xbf16>, vector<64x8xf32> -> vector<64x8xf32>
    %96 = arith.addf %90, %95 : vector<64x8xf32>
    %c18 = arith.constant 18 : index
    %c0_88 = arith.constant 0 : index
    %97 = vector.load %arg7[%c18, %c0_88] : memref<82x4xf32, #tpu.memory_space<vmem>>, vector<64x4xf32>
    %98 = arith.truncf %97 : vector<64x4xf32> to vector<64x4xbf16>
    %c2_89 = arith.constant 2 : index
    %c2_90 = arith.constant 2 : index
    %c0_91 = arith.constant 0 : index
    %c0_92 = arith.constant 0 : index
    %99 = vector.load %arg2[%c2_89, %c2_90, %c0_91, %c0_92] : memref<3x3x4x8xbf16, #tpu.memory_space<vmem>>, vector<1x1x4x8xbf16>
    %100 = vector.shape_cast %99 : vector<1x1x4x8xbf16> to vector<4x8xbf16>
    %cst_93 = arith.constant dense<0.000000e+00> : vector<64x8xf32>
    %101 = tpu.matmul %98, %100, %cst_93 {dimension_numbers = #tpu.dot_dimension_numbers<[1], [0], [0], [1], [0, 0, 1, 1], [], []>} : vector<64x4xbf16>, vector<4x8xbf16>, vector<64x8xf32> -> vector<64x8xf32>
    %102 = arith.addf %96, %101 : vector<64x8xf32>
    %cst_94 = arith.constant 0.000000e+00 : f32
    %103 = vector.shape_cast %40 : vector<64x1xi1> to vector<64x1xi1>
    %104 = vector.broadcast %103 : vector<64x1xi1> to vector<64x8xi1>
    %105 = vector.broadcast %cst_94 : f32 to vector<64x8xf32>
    %106 = arith.select %104, %102, %105 : vector<64x8xi1>, vector<64x8xf32>
    %107 = arith.addf %83, %106 : vector<64x8xf32>
    %c0_95 = arith.constant 0 : index
    %c0_96 = arith.constant 0 : index
    %108 = vector.load %arg3[%c0_95, %c0_96] : memref<1x8xf32, #tpu.memory_space<vmem>>, vector<1x8xf32>
    %109 = vector.broadcast %108 : vector<1x8xf32> to vector<64x8xf32>
    %110 = arith.addf %107, %109 : vector<64x8xf32>
    %cst_97 = arith.constant 0.000000e+00 : f32
    %111 = vector.broadcast %cst_97 : f32 to vector<64x8xf32>
    %112 = arith.maximumf %110, %111 : vector<64x8xf32>
    %c9_98 = arith.constant 9 : index
    %c0_99 = arith.constant 0 : index
    %113 = vector.load %arg8[%c9_98, %c0_99] : memref<82x8xf32, #tpu.memory_space<vmem>>, vector<64x8xf32>
    tpu.vector_store %arg8[%c9_98, %c0_99], %112 {strides = array<i32>} : memref<82x8xf32, #tpu.memory_space<vmem>>, vector<64x8xf32>,
    %cst_100 = arith.constant 0.000000e+00 : f32
    %114 = vector.broadcast %cst_100 : f32 to vector<64x8xf32>
    %c1_101 = arith.constant 1 : index
    %c0_102 = arith.constant 0 : index
    %115 = vector.load %arg8[%c1_101, %c0_102] : memref<82x8xf32, #tpu.memory_space<vmem>>, vector<64x8xf32>
    %116 = arith.truncf %115 : vector<64x8xf32> to vector<64x8xbf16>
    %c0_103 = arith.constant 0 : index
    %c1_104 = arith.constant 1 : index
    %c0_105 = arith.constant 0 : index
    %c0_106 = arith.constant 0 : index
    %117 = vector.load %arg4[%c0_103, %c1_104, %c0_105, %c0_106] : memref<3x3x8x8xbf16, #tpu.memory_space<vmem>>, vector<1x1x8x8xbf16>
    %118 = vector.shape_cast %117 : vector<1x1x8x8xbf16> to vector<8x8xbf16>
    %cst_107 = arith.constant dense<0.000000e+00> : vector<64x8xf32>
    %119 = tpu.matmul %116, %118, %cst_107 {dimension_numbers = #tpu.dot_dimension_numbers<[1], [0], [0], [1], [0, 0, 1, 1], [], []>} : vector<64x8xbf16>, vector<8x8xbf16>, vector<64x8xf32> -> vector<64x8xf32>
    %120 = arith.addf %114, %119 : vector<64x8xf32>
    %c9_108 = arith.constant 9 : index
    %c0_109 = arith.constant 0 : index
    %121 = vector.load %arg8[%c9_108, %c0_109] : memref<82x8xf32, #tpu.memory_space<vmem>>, vector<64x8xf32>
    %122 = arith.truncf %121 : vector<64x8xf32> to vector<64x8xbf16>
    %c1_110 = arith.constant 1 : index
    %c1_111 = arith.constant 1 : index
    %c0_112 = arith.constant 0 : index
    %c0_113 = arith.constant 0 : index
    %123 = vector.load %arg4[%c1_110, %c1_111, %c0_112, %c0_113] : memref<3x3x8x8xbf16, #tpu.memory_space<vmem>>, vector<1x1x8x8xbf16>
    %124 = vector.shape_cast %123 : vector<1x1x8x8xbf16> to vector<8x8xbf16>
    %cst_114 = arith.constant dense<0.000000e+00> : vector<64x8xf32>
    %125 = tpu.matmul %122, %124, %cst_114 {dimension_numbers = #tpu.dot_dimension_numbers<[1], [0], [0], [1], [0, 0, 1, 1], [], []>} : vector<64x8xbf16>, vector<8x8xbf16>, vector<64x8xf32> -> vector<64x8xf32>
    %126 = arith.addf %120, %125 : vector<64x8xf32>
    %c17_115 = arith.constant 17 : index
    %c0_116 = arith.constant 0 : index
    %127 = vector.load %arg8[%c17_115, %c0_116] : memref<82x8xf32, #tpu.memory_space<vmem>>, vector<64x8xf32>
    %128 = arith.truncf %127 : vector<64x8xf32> to vector<64x8xbf16>
    %c2_117 = arith.constant 2 : index
    %c1_118 = arith.constant 1 : index
    %c0_119 = arith.constant 0 : index
    %c0_120 = arith.constant 0 : index
    %129 = vector.load %arg4[%c2_117, %c1_118, %c0_119, %c0_120] : memref<3x3x8x8xbf16, #tpu.memory_space<vmem>>, vector<1x1x8x8xbf16>
    %130 = vector.shape_cast %129 : vector<1x1x8x8xbf16> to vector<8x8xbf16>
    %cst_121 = arith.constant dense<0.000000e+00> : vector<64x8xf32>
    %131 = tpu.matmul %128, %130, %cst_121 {dimension_numbers = #tpu.dot_dimension_numbers<[1], [0], [0], [1], [0, 0, 1, 1], [], []>} : vector<64x8xbf16>, vector<8x8xbf16>, vector<64x8xf32> -> vector<64x8xf32>
    %132 = arith.addf %126, %131 : vector<64x8xf32>
    %cst_122 = arith.constant 0.000000e+00 : f32
    %133 = vector.broadcast %cst_122 : f32 to vector<64x8xf32>
    %c0_123 = arith.constant 0 : index
    %c0_124 = arith.constant 0 : index
    %134 = vector.load %arg8[%c0_123, %c0_124] : memref<82x8xf32, #tpu.memory_space<vmem>>, vector<64x8xf32>
    %135 = arith.truncf %134 : vector<64x8xf32> to vector<64x8xbf16>
    %c0_125 = arith.constant 0 : index
    %c0_126 = arith.constant 0 : index
    %c0_127 = arith.constant 0 : index
    %c0_128 = arith.constant 0 : index
    %136 = vector.load %arg4[%c0_125, %c0_126, %c0_127, %c0_128] : memref<3x3x8x8xbf16, #tpu.memory_space<vmem>>, vector<1x1x8x8xbf16>
    %137 = vector.shape_cast %136 : vector<1x1x8x8xbf16> to vector<8x8xbf16>
    %cst_129 = arith.constant dense<0.000000e+00> : vector<64x8xf32>
    %138 = tpu.matmul %135, %137, %cst_129 {dimension_numbers = #tpu.dot_dimension_numbers<[1], [0], [0], [1], [0, 0, 1, 1], [], []>} : vector<64x8xbf16>, vector<8x8xbf16>, vector<64x8xf32> -> vector<64x8xf32>
    %139 = arith.addf %133, %138 : vector<64x8xf32>
    %c8_130 = arith.constant 8 : index
    %c0_131 = arith.constant 0 : index
    %140 = vector.load %arg8[%c8_130, %c0_131] : memref<82x8xf32, #tpu.memory_space<vmem>>, vector<64x8xf32>
    %141 = arith.truncf %140 : vector<64x8xf32> to vector<64x8xbf16>
    %c1_132 = arith.constant 1 : index
    %c0_133 = arith.constant 0 : index
    %c0_134 = arith.constant 0 : index
    %c0_135 = arith.constant 0 : index
    %142 = vector.load %arg4[%c1_132, %c0_133, %c0_134, %c0_135] : memref<3x3x8x8xbf16, #tpu.memory_space<vmem>>, vector<1x1x8x8xbf16>
    %143 = vector.shape_cast %142 : vector<1x1x8x8xbf16> to vector<8x8xbf16>
    %cst_136 = arith.constant dense<0.000000e+00> : vector<64x8xf32>
    %144 = tpu.matmul %141, %143, %cst_136 {dimension_numbers = #tpu.dot_dimension_numbers<[1], [0], [0], [1], [0, 0, 1, 1], [], []>} : vector<64x8xbf16>, vector<8x8xbf16>, vector<64x8xf32> -> vector<64x8xf32>
    %145 = arith.addf %139, %144 : vector<64x8xf32>
    %c16_137 = arith.constant 16 : index
    %c0_138 = arith.constant 0 : index
    %146 = vector.load %arg8[%c16_137, %c0_138] : memref<82x8xf32, #tpu.memory_space<vmem>>, vector<64x8xf32>
    %147 = arith.truncf %146 : vector<64x8xf32> to vector<64x8xbf16>
    %c2_139 = arith.constant 2 : index
    %c0_140 = arith.constant 0 : index
    %c0_141 = arith.constant 0 : index
    %c0_142 = arith.constant 0 : index
    %148 = vector.load %arg4[%c2_139, %c0_140, %c0_141, %c0_142] : memref<3x3x8x8xbf16, #tpu.memory_space<vmem>>, vector<1x1x8x8xbf16>
    %149 = vector.shape_cast %148 : vector<1x1x8x8xbf16> to vector<8x8xbf16>
    %cst_143 = arith.constant dense<0.000000e+00> : vector<64x8xf32>
    %150 = tpu.matmul %147, %149, %cst_143 {dimension_numbers = #tpu.dot_dimension_numbers<[1], [0], [0], [1], [0, 0, 1, 1], [], []>} : vector<64x8xbf16>, vector<8x8xbf16>, vector<64x8xf32> -> vector<64x8xf32>
    %151 = arith.addf %145, %150 : vector<64x8xf32>
    %cst_144 = arith.constant 0.000000e+00 : f32
    %152 = vector.shape_cast %38 : vector<64x1xi1> to vector<64x1xi1>
    %153 = vector.broadcast %152 : vector<64x1xi1> to vector<64x8xi1>
    %154 = vector.broadcast %cst_144 : f32 to vector<64x8xf32>
    %155 = arith.select %153, %151, %154 : vector<64x8xi1>, vector<64x8xf32>
    %156 = arith.addf %132, %155 : vector<64x8xf32>
    %cst_145 = arith.constant 0.000000e+00 : f32
    %157 = vector.broadcast %cst_145 : f32 to vector<64x8xf32>
    %c2_146 = arith.constant 2 : index
    %c0_147 = arith.constant 0 : index
    %158 = vector.load %arg8[%c2_146, %c0_147] : memref<82x8xf32, #tpu.memory_space<vmem>>, vector<64x8xf32>
    %159 = arith.truncf %158 : vector<64x8xf32> to vector<64x8xbf16>
    %c0_148 = arith.constant 0 : index
    %c2_149 = arith.constant 2 : index
    %c0_150 = arith.constant 0 : index
    %c0_151 = arith.constant 0 : index
    %160 = vector.load %arg4[%c0_148, %c2_149, %c0_150, %c0_151] : memref<3x3x8x8xbf16, #tpu.memory_space<vmem>>, vector<1x1x8x8xbf16>
    %161 = vector.shape_cast %160 : vector<1x1x8x8xbf16> to vector<8x8xbf16>
    %cst_152 = arith.constant dense<0.000000e+00> : vector<64x8xf32>
    %162 = tpu.matmul %159, %161, %cst_152 {dimension_numbers = #tpu.dot_dimension_numbers<[1], [0], [0], [1], [0, 0, 1, 1], [], []>} : vector<64x8xbf16>, vector<8x8xbf16>, vector<64x8xf32> -> vector<64x8xf32>
    %163 = arith.addf %157, %162 : vector<64x8xf32>
    %c10_153 = arith.constant 10 : index
    %c0_154 = arith.constant 0 : index
    %164 = vector.load %arg8[%c10_153, %c0_154] : memref<82x8xf32, #tpu.memory_space<vmem>>, vector<64x8xf32>
    %165 = arith.truncf %164 : vector<64x8xf32> to vector<64x8xbf16>
    %c1_155 = arith.constant 1 : index
    %c2_156 = arith.constant 2 : index
    %c0_157 = arith.constant 0 : index
    %c0_158 = arith.constant 0 : index
    %166 = vector.load %arg4[%c1_155, %c2_156, %c0_157, %c0_158] : memref<3x3x8x8xbf16, #tpu.memory_space<vmem>>, vector<1x1x8x8xbf16>
    %167 = vector.shape_cast %166 : vector<1x1x8x8xbf16> to vector<8x8xbf16>
    %cst_159 = arith.constant dense<0.000000e+00> : vector<64x8xf32>
    %168 = tpu.matmul %165, %167, %cst_159 {dimension_numbers = #tpu.dot_dimension_numbers<[1], [0], [0], [1], [0, 0, 1, 1], [], []>} : vector<64x8xbf16>, vector<8x8xbf16>, vector<64x8xf32> -> vector<64x8xf32>
    %169 = arith.addf %163, %168 : vector<64x8xf32>
    %c18_160 = arith.constant 18 : index
    %c0_161 = arith.constant 0 : index
    %170 = vector.load %arg8[%c18_160, %c0_161] : memref<82x8xf32, #tpu.memory_space<vmem>>, vector<64x8xf32>
    %171 = arith.truncf %170 : vector<64x8xf32> to vector<64x8xbf16>
    %c2_162 = arith.constant 2 : index
    %c2_163 = arith.constant 2 : index
    %c0_164 = arith.constant 0 : index
    %c0_165 = arith.constant 0 : index
    %172 = vector.load %arg4[%c2_162, %c2_163, %c0_164, %c0_165] : memref<3x3x8x8xbf16, #tpu.memory_space<vmem>>, vector<1x1x8x8xbf16>
    %173 = vector.shape_cast %172 : vector<1x1x8x8xbf16> to vector<8x8xbf16>
    %cst_166 = arith.constant dense<0.000000e+00> : vector<64x8xf32>
    %174 = tpu.matmul %171, %173, %cst_166 {dimension_numbers = #tpu.dot_dimension_numbers<[1], [0], [0], [1], [0, 0, 1, 1], [], []>} : vector<64x8xbf16>, vector<8x8xbf16>, vector<64x8xf32> -> vector<64x8xf32>
    %175 = arith.addf %169, %174 : vector<64x8xf32>
    %cst_167 = arith.constant 0.000000e+00 : f32
    %176 = vector.shape_cast %40 : vector<64x1xi1> to vector<64x1xi1>
    %177 = vector.broadcast %176 : vector<64x1xi1> to vector<64x8xi1>
    %178 = vector.broadcast %cst_167 : f32 to vector<64x8xf32>
    %179 = arith.select %177, %175, %178 : vector<64x8xi1>, vector<64x8xf32>
    %180 = arith.addf %156, %179 : vector<64x8xf32>
    %c0_168 = arith.constant 0 : index
    %c0_169 = arith.constant 0 : index
    %181 = vector.load %arg5[%c0_168, %c0_169] : memref<1x8xf32, #tpu.memory_space<vmem>>, vector<1x8xf32>
    %182 = vector.broadcast %181 : vector<1x8xf32> to vector<64x8xf32>
    %183 = arith.addf %180, %182 : vector<64x8xf32>
    %cst_170 = arith.constant 0.000000e+00 : f32
    %184 = vector.broadcast %cst_170 : f32 to vector<64x8xf32>
    %185 = arith.maximumf %183, %184 : vector<64x8xf32>
    %c0_171 = arith.constant 0 : index
    %c0_172 = arith.constant 0 : index
    %c0_173 = arith.constant 0 : index
    %186 = vector.load %arg6[%c0_171, %c0_172, %c0_173] : memref<1x64x8xf32, #tpu.memory_space<vmem>>, vector<1x64x8xf32>
    %187 = vector.shape_cast %186 : vector<1x64x8xf32> to vector<64x8xf32>
    %188 = vector.shape_cast %185 : vector<64x8xf32> to vector<1x64x8xf32>
    tpu.vector_store %arg6[%c0_171, %c0_172, %c0_173], %188 {strides = array<i32>} : memref<1x64x8xf32, #tpu.memory_space<vmem>>, vector<1x64x8xf32>,
    return
  }
  func.func @transform_0(%arg0: i32) -> (i32, i32, i32, i32, i32) {
    %c0_i32 = arith.constant 0 : i32
    %c0_i32_0 = arith.constant 0 : i32
    %c0_i32_1 = arith.constant 0 : i32
    %c0_i32_2 = arith.constant 0 : i32
    %c0_i32_3 = arith.constant 0 : i32
    return %arg0, %c0_i32, %c0_i32_0, %c0_i32_1, %c0_i32_2 : i32, i32, i32, i32, i32
  }
  func.func @transform_1(%arg0: i32) -> (i32, i32, i32, i32) {
    %c0_i32 = arith.constant 0 : i32
    %c0_i32_0 = arith.constant 0 : i32
    %c0_i32_1 = arith.constant 0 : i32
    %c0_i32_2 = arith.constant 0 : i32
    %c0_i32_3 = arith.constant 0 : i32
    return %c0_i32, %c0_i32_0, %c0_i32_1, %c0_i32_2 : i32, i32, i32, i32
  }
  func.func @transform_2(%arg0: i32) -> (i32, i32) {
    %c0_i32 = arith.constant 0 : i32
    %c0_i32_0 = arith.constant 0 : i32
    %c0_i32_1 = arith.constant 0 : i32
    return %c0_i32, %c0_i32_0 : i32, i32
  }
  func.func @transform_3(%arg0: i32) -> (i32, i32, i32, i32) {
    %c0_i32 = arith.constant 0 : i32
    %c0_i32_0 = arith.constant 0 : i32
    %c0_i32_1 = arith.constant 0 : i32
    %c0_i32_2 = arith.constant 0 : i32
    %c0_i32_3 = arith.constant 0 : i32
    return %c0_i32, %c0_i32_0, %c0_i32_1, %c0_i32_2 : i32, i32, i32, i32
  }
  func.func @transform_4(%arg0: i32) -> (i32, i32) {
    %c0_i32 = arith.constant 0 : i32
    %c0_i32_0 = arith.constant 0 : i32
    %c0_i32_1 = arith.constant 0 : i32
    return %c0_i32, %c0_i32_0 : i32, i32
  }
  func.func @transform_5(%arg0: i32) -> (i32, i32, i32) {
    %c0_i32 = arith.constant 0 : i32
    %c0_i32_0 = arith.constant 0 : i32
    %c0_i32_1 = arith.constant 0 : i32
    return %arg0, %c0_i32, %c0_i32_0 : i32, i32, i32
  }
}

</mosaic_0001>

<bundles_post_ra>
// kernel: tpu_custom_call.1
= control target key start
LH: loop header
LB: loop body
LE: loop exit
PB: predicated region body
PF: predicated region fallthrough
CT: control target
= control target key end

     0   :  { %s2800_s18 = smov 0   ;;  %s3426_s0 = inlined_call_operand.vmem [shape: f32[2,2,2,64,4], index: 0, kind: input, shape index: {}]   ;;  %s3427_s1 = inlined_call_operand.vmem [shape: bf16[3,3,4,8], index: 1, kind: input, shape index: {}]   ;;  %s3428_s2 = inlined_call_operand.vmem [shape: f32[1,8], index: 2, kind: input, shape index: {}]   ;;  %s3429_s3 = inlined_call_operand.vmem [shape: bf16[3,3,8,8], index: 3, kind: input, shape index: {}]   ;;  %s3430_s4 = inlined_call_operand.vmem [shape: f32[1,8], index: 4, kind: input, shape index: {}]   ;;  %s3431_s5 = inlined_call_operand.vmem [shape: f32[2,64,8], index: 5, kind: output, shape index: {}]  }
   0x1 LB: > { %s2337_s19 = sadd.s32 4294967295, %s2767_s18   ;;  %p2341_p0 = scmp.ge.s32.totalorder %s2767_s18, 1  ;;  %s2767_s18 = sphi %s2800_s18, %s15_s18  }
   0x2   : > { %p187_p1 = scmp.lt.s32.totalorder %s2767_s18, 3 }
   0x4   : > { %p188_p2 = pnand %p2341_p0, %p187_p1 }
   0x6   : > { %191 = sbr.rel (%p188_p2) target bundleno = 600 (0x258), region = 40 }
   0xb   : > { %v2371_v0 = vld [vmem:[%s3427_s1 + $0x8] sm:$0x3]  ;;  %vm459_vm0 = vcmask 1041408   ;;  %v2370_v1 = vld [vmem:[%s3427_s1 + $0x2] sm:$0x3]  ;;  %p215_p3 = scmp.lt.s32.totalorder %s2337_s19, 1 }
   0xc   : > { %2734 = vmatprep.subr.msk.bf16.mxu0 %vm459_vm0, %v2371_v0  ;;  %v461_v2 = vsel %vm459_vm0, %v2371_v0, 0  ;;  %2735 = vmatprep.subr.msk.bf16.mxu1 %vm459_vm0, %v2370_v1  ;;  %v541_v3 = vsel %vm459_vm0, %v2370_v1, 0  ;;  %vm285_vm1 = vcmask 31744   ;;  %v2821_v4 = vld [vmem:[%s3427_s1 + $0xe] sm:$0x3]  ;;  %v2769_v5 = vmov 0.0  }
   0xd   : > { %2555 = vmatpush3.bf16.msra.mxu0 %v461_v2  ;;  %2565 = vmatpush3.bf16.msra.mxu1 %v541_v3  ;;  %s3631_s19 = smov (!%p215_p3, %s2337_s19), 1  ;;  %286 = vst.msk [vmem:[#allocation2] sm:$0xff] %vm285_vm1, %v2769_v5  ;;  %vm287_vm2 = vcmask 24576   ;;  %289 = vst.msk [vmem:[#allocation2 + $0x49] sm:$0xff] %vm285_vm1, %v2769_v5  ;;  %v2832_v6 = vld [vmem:[%s3427_s1 + $0x6] sm:$0x3] }
   0xe   : > { %288 = vst.msk [vmem:[#allocation2 + $0x8] sm:$0x1] %vm287_vm2, %v2769_v5  ;;  %290 = vst.msk [vmem:[#allocation2 + $0x51] sm:$0x1] %vm287_vm2, %v2769_v5  ;;  %2736 = vmatprep.subr.msk.bf16.mxu0 %vm459_vm0, %v2821_v4  ;;  %2737 = vmatprep.subr.msk.bf16.mxu1 %vm459_vm0, %v2832_v6  ;;  %s2462_s28 = sshll.u32 %s3631_s19, 8  ;;  %vm3435_vm3 = vcmask 64512  }
   0xf   : > { %s2844_s6 = scalar_lea.vmem %s3426_s0, %s2462_s28  ;;  %292 = vst.msk [vmem:[#allocation3] sm:$0xff] %vm3435_vm3, %v2769_v5  ;;  %295 = vst.msk [vmem:[#allocation3 + $0x49] sm:$0xff] %vm3435_vm3, %v2769_v5  ;;  %vm293_vm4 = vcmask 57344   ;;  %vm3434_vm5 = vcmask 1043456   ;;  %s2463_s16 = sshll.u32 %s3631_s19, 6 }
  0x10   : > { %v226_v7 = vld [vmem:[%s2844_s6] sm:$0xff]  ;;  %v227_v8 = vld [vmem:[%s2844_s6 + $0x8] sm:$0xff]  ;;  %v228_v9 = vld [vmem:[%s2844_s6 + $0x10] sm:$0xff]  ;;  %294 = vst.msk [vmem:[#allocation3 + $0x8] sm:$0x1] %vm293_vm4, %v2769_v5  ;;  %s3373_s20 = scalar_lea.vmem %s3431_s5, %s2463_s16 }
  0x11   : > { %v229_v10 = vld [vmem:[%s2844_s6 + $0x18] sm:$0xff]  ;;  %v2346_v11 = vld [vmem:[%s2844_s6 + $0x40] sm:$0xff]  ;;  %v2347_v12 = vld [vmem:[%s2844_s6 + $0x48] sm:$0xff]  ;;  %296 = vst.msk [vmem:[#allocation3 + $0x51] sm:$0x1] %vm293_vm4, %v2769_v5 }
  0x12   : > { %v2348_v13 = vld [vmem:[%s2844_s6 + $0x50] sm:$0xff]  ;;  %v2349_v14 = vld [vmem:[%s2844_s6 + $0x58] sm:$0xff]  ;;  %v2354_v15 = vld [vmem:[%s2844_s6 + $0x80] sm:$0xff]  ;;  %v243_v16 = vmax.f32 %v226_v7, %v2346_v11  ;;  %v244_v17 = vmax.f32 %v227_v8, %v2347_v12  ;;  %v635_v11 = vsel %vm459_vm0, %v2821_v4, 0  ;;  %v743_v12 = vsel %vm459_vm0, %v2832_v6, 0 }
  0x13   : > { %v245_v18 = vmax.f32 %v228_v9, %v2348_v13  ;;  %v2355_v19 = vld [vmem:[%s2844_s6 + $0x88] sm:$0xff]  ;;  %v2356_v20 = vld [vmem:[%s2844_s6 + $0x90] sm:$0xff]  ;;  %v2357_v21 = vld [vmem:[%s2844_s6 + $0x98] sm:$0xff]  ;;  %v246_v22 = vmax.f32 %v229_v10, %v2349_v14 }
  0x14   : > { %v2362_v23 = vld [vmem:[%s2844_s6 + $0xc0] sm:$0xff]  ;;  %v2363_v24 = vld [vmem:[%s2844_s6 + $0xc8] sm:$0xff]  ;;  %v2364_v25 = vld [vmem:[%s2844_s6 + $0xd0] sm:$0xff] }
  0x15   : > { %v2365_v26 = vld [vmem:[%s2844_s6 + $0xd8] sm:$0xff]  ;;  %v269_v27 = vmax.f32 %v2354_v15, %v2362_v23  ;;  %v270_v28 = vmax.f32 %v2355_v19, %v2363_v24  ;;  %v271_v29 = vmax.f32 %v2356_v20, %v2364_v25  ;;  %v230_v30 = vld [vmem:[%s2844_s6 + $0x20] sm:$0xff]  ;;  %v231_v32 = vld [vmem:[%s2844_s6 + $0x28] sm:$0xff] }
  0x16   : > { %v272_v31 = vmax.f32 %v2357_v21, %v2365_v26  ;;  %v2350_v33 = vld [vmem:[%s2844_s6 + $0x60] sm:$0xff]  ;;  %v2351_v34 = vld [vmem:[%s2844_s6 + $0x68] sm:$0xff]  ;;  %v232_v46 = vld [vmem:[%s2844_s6 + $0x30] sm:$0xff] }
  0x17   : > { %v277_v35 = vmax.f32 %v243_v16, %v269_v27  ;;  %v278_v36 = vmax.f32 %v244_v17, %v270_v28  ;;  %v279_v37 = vmax.f32 %v245_v18, %v271_v29  ;;  %v247_v38 = vmax.f32 %v230_v30, %v2350_v33  ;;  %v2358_v39 = vld [vmem:[%s2844_s6 + $0xa0] sm:$0xff]  ;;  %v2359_v40 = vld [vmem:[%s2844_s6 + $0xa8] sm:$0xff]  ;;  %v233_v47 = vld [vmem:[%s2844_s6 + $0x38] sm:$0xff] }
  0x18   : > { %v2366_v41 = vld [vmem:[%s2844_s6 + $0xe0] sm:$0xff]  ;;  %v280_v42 = vmax.f32 %v246_v22, %v272_v31  ;;  %v248_v43 = vmax.f32 %v231_v32, %v2351_v34  ;;  %v2367_v44 = vld [vmem:[%s2844_s6 + $0xe8] sm:$0xff]  ;;  %v2352_v49 = vld [vmem:[%s2844_s6 + $0x70] sm:$0xff] }
  0x19   : > { %v273_v45 = vmax.f32 %v2358_v39, %v2366_v41  ;;  %297 = vst.msk [vmem:[#allocation2 + $0x9] sm:$0xff] %vm285_vm1, %v277_v35  ;;  %298 = vst.msk [vmem:[#allocation2 + $0x11] sm:$0xff] %vm285_vm1, %v278_v36  ;;  %v274_v48 = vmax.f32 %v2359_v40, %v2367_v44  ;;  %v2353_v50 = vld [vmem:[%s2844_s6 + $0x78] sm:$0xff]  ;;  %v2360_v51 = vld [vmem:[%s2844_s6 + $0xb0] sm:$0xff]  ;;  %v249_v53 = vmax.f32 %v232_v46, %v2352_v49 }
  0x1a   : > { %299 = vst.msk [vmem:[#allocation2 + $0x19] sm:$0xff] %vm285_vm1, %v279_v37  ;;  %300 = vst.msk [vmem:[#allocation2 + $0x21] sm:$0xff] %vm285_vm1, %v280_v42  ;;  %v250_v54 = vmax.f32 %v233_v47, %v2353_v50  ;;  %v2361_v55 = vld [vmem:[%s2844_s6 + $0xb8] sm:$0xff]  ;;  %v2368_v56 = vld [vmem:[%s2844_s6 + $0xf0] sm:$0xff] }
  0x1b   : > { %v281_v52 = vmax.f32 %v247_v38, %v273_v45  ;;  %v2369_v57 = vld [vmem:[%s2844_s6 + $0xf8] sm:$0xff]  ;;  %v282_v58 = vmax.f32 %v248_v43, %v274_v48  ;;  %v275_v59 = vmax.f32 %v2360_v51, %v2368_v56  ;;  %v426_v63 = vld [vmem:[#allocation2 + $0x1] sm:$0xff]  ;;  %v2394_v4 = vld [vmem:[%s3427_s1 + $0xc] sm:$0x3] }
  0x1c   : > { %v276_v60 = vmax.f32 %v2361_v55, %v2369_v57  ;;  %v722_v14 = vld [vmem:[%s3427_s1] sm:$0x3]  ;;  %v917_v31 = vsel %vm459_vm0, %v2394_v4, 0  ;;  %v2400_v32 = vld [vmem:[%s3427_s1 + $0xa] sm:$0x3] }
  0x1d   : > { %301 = vst.msk [vmem:[#allocation2 + $0x29] sm:$0xff] %vm285_vm1, %v281_v52  ;;  %302 = vst.msk [vmem:[#allocation2 + $0x31] sm:$0xff] %vm285_vm1, %v282_v58  ;;  %v283_v61 = vmax.f32 %v249_v53, %v275_v59  ;;  %v823_v29 = vsel %vm459_vm0, %v722_v14, 0  ;;  %v2399_v33 = vld [vmem:[%s3427_s1 + $0x4] sm:$0x3]  ;;  %v615_v34 = vld [vmem:[#allocation2 + $0x49] sm:$0xff] }
  0x1e   : > { %v284_v62 = vmax.f32 %v250_v54, %v276_v60  ;;  %v710_v37 = vld [vmem:[#allocation2] sm:$0xff]  ;;  %v1058_v43 = vsel %vm459_vm0, %v2400_v32, 0  ;;  %v1138_v45 = vsel %vm459_vm0, %v2399_v33, 0  ;;  %v2409_v46 = vld [vmem:[%s3427_s1 + $0x10] sm:$0x3] }
  0x1f   : > { %303 = vst.msk [vmem:[#allocation2 + $0x39] sm:$0xff] %vm285_vm1, %v283_v61  ;;  %v1232_v61 = vsel %vm459_vm0, %v2409_v46, 0  ;;  %v2970_v5 = vld [vmem:[%s3429_s3 + $0x1c] sm:$0xf] }
  0x20   : > { %304 = vst.msk [vmem:[#allocation2 + $0x41] sm:$0xff] %vm285_vm1, %v284_v62  ;;  %v427_v0 = vld [vmem:[#allocation2 + $0x9] sm:$0xff]  ;;  %v428_v1 = vld [vmem:[#allocation2 + $0x11] sm:$0xff]  ;;  %3460 = vst [vmem:[#allocation4_spill] sm:$0xff] %v2970_v5 }
  0x21   : > { %v429_v2 = vld [vmem:[#allocation2 + $0x19] sm:$0xff]  ;;  %v430_v3 = vld [vmem:[#allocation2 + $0x21] sm:$0xff]  ;;  %v441_v8 = vpack.c.bf16 %v428_v1, %v427_v0  ;;  %v434_v9 = vpack.c.bf16 %v427_v0, %v426_v63  ;;  %v712_v20 = vld [vmem:[#allocation2 + $0x10] sm:$0xff] }
  0x22   : > { %v435_v7 = vpack.c.bf16 %v429_v2, %v428_v1  ;;  %v442_v10 = vpack.c.bf16 %v430_v3, %v429_v2  ;;  %v711_v17 = vld [vmem:[#allocation2 + $0x8] sm:$0xff]  ;;  %v713_v24 = vld [vmem:[#allocation2 + $0x18] sm:$0xff]  ;;  %v714_v25 = vld [vmem:[#allocation2 + $0x20] sm:$0xff] }
  0x23   : > { %2556 = vmatprep.mubr.msk.bf16.mxu0 %vm285_vm1, %v441_v8  ;;  %2566 = vmatprep.mubr.msk.bf16.mxu1 %vm285_vm1, %v434_v9  ;;  %v724_v23 = vpack.c.bf16 %v712_v20, %v711_v17  ;;  %v725_v28 = vpack.c.bf16 %v714_v25, %v713_v24  ;;  %v719_v40 = vpack.c.bf16 %v713_v24, %v712_v20  ;;  %v1025_v48 = vld [vmem:[#allocation2 + $0xa] sm:$0xff]  ;;  %v1026_v49 = vld [vmem:[#allocation2 + $0x12] sm:$0xff]  ;;  %v1024_v50 = vld [vmem:[#allocation2 + $0x2] sm:$0xff] }
  0x24   : > { %v431_v13 = vld [vmem:[#allocation2 + $0x29] sm:$0xff]  ;;  %2557 = vmatmul.mubr.msk.bf16.vlgmr.msra.gmra.mxu0 %vm285_vm1, %v442_v10  ;;  %2567 = vmatmul.mubr.msk.bf16.vlgmr.msra.gmra.mxu1 %vm285_vm1, %v435_v7  ;;  %v432_v15 = vld [vmem:[#allocation2 + $0x31] sm:$0xff]  ;;  %v718_v41 = vpack.c.bf16 %v711_v17, %v710_v37  ;;  %v1039_v52 = vpack.c.bf16 %v1026_v49, %v1025_v48  ;;  %v1032_v53 = vpack.c.bf16 %v1025_v48, %v1024_v50  ;;  %v1027_v54 = vld [vmem:[#allocation2 + $0x1a] sm:$0xff] }
  0x25   : > { %v436_v16 = vpack.c.bf16 %v431_v13, %v430_v3  ;;  %2575 = vmatpush3.bf16.msra.mxu0 %v635_v11  ;;  %v443_v6 = vpack.c.bf16 %v432_v15, %v431_v13  ;;  %2585 = vmatpush3.bf16.msra.mxu1 %v743_v12  ;;  %v715_v26 = vld [vmem:[#allocation2 + $0x28] sm:$0xff]  ;;  %v716_v27 = vld [vmem:[#allocation2 + $0x30] sm:$0xff]  ;;  %v1033_v58 = vpack.c.bf16 %v1027_v54, %v1026_v49  ;;  %v2415_v10 = vld [vmem:[%s3429_s3 + $0x4] sm:$0xf] }
  0x26   : > { %v433_v18 = vld [vmem:[#allocation2 + $0x39] sm:$0xff]  ;;  %2738 = vmatprep.subr.msk.bf16.mxu0 %vm459_vm0, %v722_v14  ;;  %2739 = vmatprep.subr.msk.bf16.mxu1 %vm459_vm0, %v2394_v4  ;;  %v726_v30 = vpack.c.bf16 %v716_v27, %v715_v26  ;;  %v899_v42 = vpack.c.bf16 %v715_v26, %v714_v25  ;;  %v1028_v55 = vld [vmem:[#allocation2 + $0x22] sm:$0xff]  ;;  %v1029_v56 = vld [vmem:[#allocation2 + $0x2a] sm:$0xff]  ;;  %v1485_v11 = vsel %vm3434_vm5, %v2415_v10, 0 }
  0x27   : > { %2570 = vmatprep.mubr.msk.bf16.mxu1 %vm285_vm1, %v436_v16  ;;  %v440_v19 = vld [vmem:[#allocation2 + $0x41] sm:$0xff]  ;;  %2560 = vmatprep.mubr.msk.bf16.mxu0 %vm285_vm1, %v443_v6  ;;  %v437_v22 = vpack.c.bf16 %v433_v18, %v432_v15  ;;  %v717_v35 = vld [vmem:[#allocation2 + $0x38] sm:$0xff]  ;;  %v1040_v59 = vpack.c.bf16 %v1028_v55, %v1027_v54  ;;  %v1034_v62 = vpack.c.bf16 %v1029_v56, %v1028_v55  ;;  %v1212_v3 = vld [vmem:[#allocation2 + $0x4a] sm:$0xff] }
  0x28   : > { %v444_v21 = vpack.c.bf16 %v440_v19, %v433_v18  ;;  %v723_v36 = vld [vmem:[#allocation2 + $0x40] sm:$0xff]  ;;  %v619_v38 = vpack.c.bf16 %v615_v34, %v440_v19  ;;  %v900_v44 = vpack.c.bf16 %v717_v35, %v716_v27  ;;  %v897_v47 = vld [vmem:[#allocation2 + $0x48] sm:$0xff]  ;;  %v1030_v57 = vld [vmem:[#allocation2 + $0x32] sm:$0xff] }
  0x29   : > { %v727_v39 = vpack.c.bf16 %v723_v36, %v717_v35  ;;  %v901_v51 = vpack.c.bf16 %v897_v47, %v723_v36  ;;  %v1041_v60 = vpack.c.bf16 %v1030_v57, %v1029_v56  ;;  %v1031_v63 = vld [vmem:[#allocation2 + $0x3a] sm:$0xff]  ;;  %v1038_v0 = vld [vmem:[#allocation2 + $0x42] sm:$0xff]  ;;  %v2416_v8 = vld [vmem:[%s3429_s3 + $0x10] sm:$0xf] }
  0x2a   : > { %v1042_v1 = vpack.c.bf16 %v1038_v0, %v1031_v63  ;;  %v1035_v2 = vpack.c.bf16 %v1031_v63, %v1030_v57  ;;  %v1405_v9 = vsel %vm3434_vm5, %v2416_v8, 0  ;;  %v2977_v12 = vld [vmem:[%s3429_s3 + $0xc] sm:$0xf] }
  0x2b   : > { %3461 = vst [vmem:[#allocation5_spill] sm:$0xff] %v2977_v12 }
  0x2c   : > { %2561 = vmatmul.mubr.msk.bf16.gmra.mxu0 %vm285_vm1, %v444_v21  ;;  %2571 = vmatmul.mubr.msk.bf16.gmra.mxu1 %vm285_vm1, %v437_v22 }
  0x2d   : > { %2576 = vmatprep.mubr.msk.bf16.mxu0 %vm285_vm1, %v435_v7  ;;  %2586 = vmatprep.mubr.msk.bf16.mxu1 %vm285_vm1, %v724_v23  ;;  %v1216_v7 = vpack.c.bf16 %v1212_v3, %v1038_v0 }
  0x34   : > { %2577 = vmatmul.mubr.msk.bf16.vlgmr.msra.gmra.mxu0 %vm285_vm1, %v436_v16  ;;  %2587 = vmatmul.mubr.msk.bf16.vlgmr.msra.gmra.mxu1 %vm285_vm1, %v725_v28 }
  0x35   : > { %2595 = vmatpush3.bf16.msra.mxu0 %v823_v29  ;;  %2580 = vmatprep.mubr.msk.bf16.mxu0 %vm285_vm1, %v437_v22 }
  0x36   : > { %2590 = vmatprep.mubr.msk.bf16.mxu1 %vm285_vm1, %v726_v30  ;;  %2605 = vmatpush3.bf16.msra.mxu1 %v917_v31 }
  0x37   : > { %2740 = vmatprep.subr.msk.bf16.mxu0 %vm459_vm0, %v2400_v32  ;;  %2741 = vmatprep.subr.msk.bf16.mxu1 %vm459_vm0, %v2399_v33 }
  0x3c   : > { %2581 = vmatmul.mubr.msk.bf16.gmra.mxu0 %vm285_vm1, %v619_v38  ;;  %2591 = vmatmul.mubr.msk.bf16.gmra.mxu1 %vm285_vm1, %v727_v39 }
  0x3d   : > { %2596 = vmatprep.mubr.msk.bf16.mxu0 %vm285_vm1, %v718_v41  ;;  %2606 = vmatprep.mubr.msk.bf16.mxu1 %vm285_vm1, %v719_v40 }
  0x44   : > { %2597 = vmatmul.mubr.msk.bf16.vlgmr.msra.gmra.mxu0 %vm285_vm1, %v719_v40  ;;  %2607 = vmatmul.mubr.msk.bf16.vlgmr.msra.gmra.mxu1 %vm285_vm1, %v899_v42 }
  0x45   : > { %2615 = vmatpush3.bf16.msra.mxu0 %v1058_v43  ;;  %2600 = vmatprep.mubr.msk.bf16.mxu0 %vm285_vm1, %v899_v42 }
  0x46   : > { %2610 = vmatprep.mubr.msk.bf16.mxu1 %vm285_vm1, %v900_v44  ;;  %2625 = vmatpush3.bf16.msra.mxu1 %v1138_v45 }
  0x47   : > { %2742 = vmatprep.subr.msk.bf16.mxu0 %vm459_vm0, %v2409_v46  ;;  %2743 = vmatprep.subr.msk.bf16.mxu1 %vm3434_vm5, %v2416_v8 }
  0x4c   : > { %2601 = vmatmul.mubr.msk.bf16.gmra.mxu0 %vm285_vm1, %v900_v44  ;;  %2611 = vmatmul.mubr.msk.bf16.gmra.mxu1 %vm285_vm1, %v901_v51  ;;  %v305_v51 = vlaneseq }
  0x4d   : > { %2616 = vmatprep.mubr.msk.bf16.mxu0 %vm285_vm1, %v1039_v52  ;;  %2626 = vmatprep.mubr.msk.bf16.mxu1 %vm285_vm1, %v1032_v53 }
  0x4e   : > { %v306_v56 = vshrl.u32 %v305_v51, 7 }
  0x54   : > { %2617 = vmatmul.mubr.msk.bf16.vlgmr.msra.gmra.mxu0 %vm285_vm1, %v1040_v59  ;;  %2627 = vmatmul.mubr.msk.bf16.vlgmr.msra.gmra.mxu1 %vm285_vm1, %v1033_v58 }
  0x55   : > { %2635 = vmatpush3.bf16.msra.mxu0 %v1232_v61  ;;  %2620 = vmatprep.mubr.msk.bf16.mxu0 %vm285_vm1, %v1041_v60  ;;  %v308_v61 = vadd.s32 16, %v306_v56 }
  0x56   : > { %2630 = vmatprep.mubr.msk.bf16.mxu1 %vm285_vm1, %v1034_v62  ;;  %2645 = vmatpush3.bf16.msra.mxu1 %v1405_v9  ;;  %v318_v9 = vand.u32 7, %v306_v56 }
  0x57   : > { %2744 = vmatprep.subr.msk.bf16.mxu0 %vm3434_vm5, %v2415_v10  ;;  %2745 = vmatprep.subr.msk.bf16.mxu1 %vm3434_vm5, %v2970_v5  ;;  %v332_v8 = vand.u32 7, %v308_v61  ;;  %v3059_v5 = vadd.s32 32, %v306_v56  ;;  %v3477_v61 = vmov 0 }
  0x58   : > { %vm3073_vm7 = vcmp.gt.s32.totalorder %v318_v9, 0  ;;  %vm3104_vm12 = vcmp.lt.s32.totalorder %v318_v9, 7 }
  0x59   : > { %vm3069_vm6 = vcmp.gt.s32.totalorder %v332_v8, 0  ;;  %v3478_v61 = vsel %vm3073_vm7, 4294967295, %v3477_v61  ;;  %vm3092_vm10 = vcmp.lt.s32.totalorder %v332_v8, 7  ;;  %v3512_v8 = vmov 0 }
  0x5a   : > { %3479 = vst [vmem:[#allocation19_spill] sm:$0xff] %v3478_v61 }
  0x5c   : > { %2621 = vmatmul.mubr.msk.bf16.gmra.mxu0 %vm285_vm1, %v1042_v1  ;;  %2631 = vmatmul.mubr.msk.bf16.gmra.mxu1 %vm285_vm1, %v1035_v2  ;;  %v307_v1 = vadd.s32 8, %v306_v56 }
  0x5d   : > { %2636 = vmatprep.mubr.msk.bf16.mxu0 %vm285_vm1, %v1033_v58 }
  0x5e   : > { %v325_v51 = vand.u32 7, %v307_v1 }
  0x60   : > { %vm3083_vm9 = vcmp.gt.s32.totalorder %v325_v51, 0  ;;  %vm3136_vm15 = vcmp.lt.s32.totalorder %v325_v51, 7 }
  0x64   : > { %2637 = vmatmul.mubr.msk.bf16.vlgmr.msra.gmra.mxu0 %vm285_vm1, %v1034_v62  ;;  %v309_v62 = vadd.s32 24, %v306_v56 }
  0x65   : > { %2640 = vmatprep.mubr.msk.bf16.mxu0 %vm285_vm1, %v1035_v2  ;;  %2655 = vmatpush3.bf16.msra.mxu0 %v1485_v11 }
  0x66   : > { %2746 = vmatprep.subr.msk.bf16.mxu0 %vm3434_vm5, %v2977_v12  ;;  %v339_v10 = vand.u32 7, %v309_v62  ;;  %v3061_v12 = vadd.s32 56, %v306_v56  ;;  %v3480_v62 = vmov 0 }
  0x68   : > { %vm3077_vm8 = vcmp.gt.s32.totalorder %v339_v10, 0  ;;  %vm3118_vm13 = vcmp.lt.s32.totalorder %v339_v10, 7 }
  0x69   : > { %v3481_v62 = vsel %vm3077_vm8, 4294967295, %v3480_v62 }
  0x6a   : > { %3482 = vst [vmem:[#allocation20_spill] sm:$0xff] %v3481_v62 }
  0x6c   : > { %2641 = vmatmul.mubr.msk.bf16.gmra.mxu0 %vm285_vm1, %v1216_v7  ;;  %v312_v7 = vadd.s32 48, %v306_v56 }
  0xe4   : > { %v2981_v13 = vpop.f32.mrf.mxu0  ;;  %v2983_v14 = vpop.f32.mrf.mxu1 }
  0xe6   : > { %v2985_v15 = vpop.f32.mrf.mxu0  ;;  %v2987_v16 = vpop.f32.mrf.mxu1 }
  0xe8   : > { %v2989_v4 = vpop.f32.mrf.mxu0  ;;  %v2991_v6 = vpop.f32.mrf.mxu1 }
  0xea   : > { %v2993_v17 = vpop.f32.mrf.mxu0  ;;  %v2995_v18 = vpop.f32.mrf.mxu1 }
  0xec   : > { %v2997_v19 = vpop.f32.mrf.mxu0  ;;  %v2999_v20 = vpop.f32.mrf.mxu1 }
  0xee   : > { %v3001_v21 = vpop.f32.mrf.mxu0  ;;  %v3003_v22 = vpop.f32.mrf.mxu1 }
  0xf0   : > { %v3005_v23 = vpop.f32.mrf.mxu0  ;;  %v3007_v24 = vpop.f32.mrf.mxu1 }
  0xf2   : > { %v3009_v25 = vpop.f32.mrf.mxu0  ;;  %v3011_v26 = vpop.f32.mrf.mxu1 }
  0xf4   : > { %v3013_v27 = vpop.f32.mrf.mxu0  ;;  %v2588_v28 = vpop.f32.mrf.mxu1 }
  0xf6   : > { %v3015_v29 = vpop.f32.mrf.mxu0  ;;  %v779_v30 = vpop.f32.mrf.mxu1 }
  0xf8   : > { %v3017_v31 = vpop.f32.mrf.mxu0  ;;  %v2589_v32 = vpop.f32.mrf.mxu1 }
  0xfa   : > { %v3019_v33 = vpop.f32.mrf.mxu0  ;;  %v782_v34 = vpop.f32.mrf.mxu1 }
  0xfc   : > { %v3021_v35 = vpop.f32.mrf.mxu0  ;;  %v3023_v36 = vpop.f32.mrf.mxu1 }
  0xfe   : > { %v3025_v37 = vpop.f32.mrf.mxu0  ;;  %v3027_v38 = vpop.f32.mrf.mxu1 }
 0x100   : > { %v3029_v39 = vpop.f32.mrf.mxu0  ;;  %v3031_v40 = vpop.f32.mrf.mxu1 }
 0x101   : > { %3462 = vst [vmem:[#allocation6_spill] sm:$0xff] %v3031_v40 }
 0x102   : > { %v3033_v41 = vpop.f32.mrf.mxu0  ;;  %v3035_v42 = vpop.f32.mrf.mxu1 }
 0x103   : > { %3463 = vst [vmem:[#allocation7_spill] sm:$0xff] %v3033_v41  ;;  %3464 = vst [vmem:[#allocation8_spill] sm:$0xff] %v3035_v42  ;;  %v3486_v41 = vmov 0 }
 0x104   : > { %v2598_v43 = vpop.f32.mrf.mxu0  ;;  %v2608_v44 = vpop.f32.mrf.mxu1  ;;  %v3487_v41 = vsel %vm3092_vm10, 4294967295, %v3486_v41 }
 0x105   : > { %v868_v42 = vadd.f32 %v2598_v43, %v2588_v28  ;;  %v346_v28 = vand.u32 7, %v3059_v5  ;;  %3488 = vst [vmem:[#allocation22_spill] sm:$0xff] %v3487_v41  ;;  %v3489_v5 = vmov 0 }
 0x106   : > { %v859_v45 = vpop.f32.mrf.mxu0  ;;  %v953_v46 = vpop.f32.mrf.mxu1 }
 0x107   : > { %v860_v1 = vadd.f32 %v859_v45, %v779_v30  ;;  %v586_v30 = vadd.f32 %v2983_v14, %v2981_v13  ;;  %v986_v45 = vadd.f32 %v2608_v44, %v868_v42  ;;  %v602_v13 = vadd.f32 %v2999_v20, %v2997_v19 }
 0x108   : > { %v2599_v47 = vpop.f32.mrf.mxu0  ;;  %v2609_v48 = vpop.f32.mrf.mxu1  ;;  %v594_v14 = vadd.f32 %v3003_v22, %v3001_v21  ;;  %v605_v42 = vadd.f32 %v3007_v24, %v3005_v23  ;;  %vm3126_vm14 = vcmp.gt.s32.totalorder %v346_v28, 0  ;;  %v3501_v23 = vmov 0 }
 0x109   : > { %v704_v19 = vadd.f32 %v3013_v27, %v586_v30  ;;  %v3502_v23 = vsel %vm3136_vm15, 4294967295, %v3501_v23  ;;  %vm3179_vm4 = vcmp.lt.s32.totalorder %v346_v28, 7 }
 0x10a   : > { %v862_v49 = vpop.f32.mrf.mxu0  ;;  %v3037_v50 = vpop.f32.mrf.mxu1  ;;  %3503 = vst [vmem:[#allocation27_spill] sm:$0xff] %v3502_v23 }
 0x10b   : > { %v863_v43 = vadd.f32 %v862_v49, %v782_v34  ;;  %v589_v34 = vadd.f32 %v2991_v6, %v2989_v4  ;;  %v597_v4 = vadd.f32 %v3011_v26, %v3009_v25  ;;  %v984_v6 = vadd.f32 %v953_v46, %v860_v1 }
 0x10c   : > { %v2602_v52 = vpop.f32.mrf.mxu0  ;;  %v3039_v53 = vpop.f32.mrf.mxu1  ;;  %v1010_v26 = vsel %vm3069_vm6, %v986_v45, 0.0  ;;  %v3146_v46 = vadd.f32 %v3025_v37, %v594_v14 }
 0x10d   : > { %3465 = vst [vmem:[#allocation9_spill] sm:$0xff] %v3039_v53  ;;  %v985_v21 = vadd.f32 %v3037_v50, %v863_v43  ;;  %v884_v22 = vadd.f32 %v2602_v52, %v3023_v36  ;;  %v705_v24 = vadd.f32 %v3017_v31, %v589_v34  ;;  %v3149_v36 = vadd.f32 %v3029_v39, %v605_v42  ;;  %v3192_v34 = vld [vmem:[%s3428_s2] ss:$0 sm:$0xff] }
 0x10e   : > { %v3041_v54 = vpop.f32.mrf.mxu0  ;;  %v3043_v55 = vpop.f32.mrf.mxu1  ;;  %v3504_v50 = vmov 0 }
 0x10f   : > { %3466 = vst [vmem:[#allocation10_spill] sm:$0xff] %v3043_v55  ;;  %v360_v55 = vand.u32 7, %v312_v7  ;;  %v367_v7 = vand.u32 7, %v3061_v12  ;;  %v3492_v12 = vmov 0 }
 0x110   : > { %v3045_v57 = vpop.f32.mrf.mxu0  ;;  %v3047_v58 = vpop.f32.mrf.mxu1  ;;  %v3493_v12 = vsel %vm3104_vm12, 4294967295, %v3492_v12 }
 0x111   : > { %3467 = vst [vmem:[#allocation11_spill] sm:$0xff] %v3045_v57  ;;  %3468 = vst [vmem:[#allocation12_spill] sm:$0xff] %v3047_v58  ;;  %v3474_v57 = vmov 0  ;;  %vm3100_vm11 = vcmp.gt.s32.totalorder %v360_v55, 0  ;;  %vm3153_vm0 = vcmp.gt.s32.totalorder %v367_v7, 0  ;;  %vm3157_vm1 = vcmp.lt.s32.totalorder %v360_v55, 7 }
 0x112   : > { %v3049_v59 = vpop.f32.mrf.mxu0  ;;  %v3051_v60 = vpop.f32.mrf.mxu1  ;;  %v3475_v57 = vsel %vm3069_vm6, 4294967295, %v3474_v57  ;;  %v3490_v5 = vsel %vm3100_vm11, 4294967295, %v3489_v5  ;;  %3494 = vst [vmem:[#allocation24_spill] sm:$0xff] %v3493_v12  ;;  %v3505_v50 = vsel %vm3153_vm0, 4294967295, %v3504_v50  ;;  %v1009_v55 = vsel %vm3083_vm9, %v985_v21, 0.0 }
 0x113   : > { %3469 = vst [vmem:[#allocation13_spill] sm:$0xff] %v3049_v59  ;;  %3470 = vst [vmem:[#allocation14_spill] sm:$0xff] %v3051_v60  ;;  %v3063_v60 = vadd.s32 40, %v306_v56  ;;  %vm3195_vm5 = vcmp.lt.s32.totalorder %v367_v7, 7 }
 0x114   : > { %v2618_v63 = vpop.f32.mrf.mxu0  ;;  %v2628_v0 = vpop.f32.mrf.mxu1  ;;  %3476 = vst [vmem:[#allocation18_spill] sm:$0xff] %v3475_v57  ;;  %3491 = vst [vmem:[#allocation23_spill] sm:$0xff] %v3490_v5 }
 0x115   : > { %v1183_v27 = vadd.f32 %v2628_v0, %v2618_v63  ;;  %3506 = vst [vmem:[#allocation28_spill] sm:$0xff] %v3505_v50  ;;  %v3511_v63 = vld [vmem:[#allocation9_spill] sm:$0xff] }
 0x116   : > { %v3053_v2 = vpop.f32.mrf.mxu0  ;;  %v3055_v3 = vpop.f32.mrf.mxu1  ;;  %v990_v0 = vadd.f32 %v3511_v63, %v884_v22  ;;  %v3522_v14 = vld [vmem:[#allocation10_spill] sm:$0xff] }
 0x117   : > { %v1175_v39 = vadd.f32 %v3055_v3, %v3053_v2  ;;  %v3515_v2 = vmov 0  ;;  %v3518_v3 = vld [vmem:[#allocation6_spill] sm:$0xff] }
 0x118   : > { %v3057_v11 = vpop.f32.mrf.mxu0  ;;  %v3065_v58 = vpop.f32.mrf.mxu1  ;;  %v3516_v2 = vsel %vm3179_vm4, 4294967295, %v3515_v2  ;;  %v3519_v51 = vld [vmem:[#allocation11_spill] sm:$0xff] }
 0x119   : > { %3471 = vst [vmem:[#allocation15_spill] sm:$0xff] %v3057_v11  ;;  %3472 = vst [vmem:[#allocation16_spill] sm:$0xff] %v3065_v58  ;;  %v871_v58 = vadd.f32 %v2599_v47, %v2589_v32  ;;  %v353_v11 = vand.u32 7, %v3063_v60  ;;  %v578_v32 = vadd.f32 %v2987_v16, %v2985_v15  ;;  %v581_v47 = vadd.f32 %v2995_v18, %v2993_v17 }
 0x11a   : > { %v3067_v59 = vpop.f32.mrf.mxu0  ;;  %v1177_v40 = vpop.f32.mrf.mxu1  ;;  %v3495_v16 = vmov 0  ;;  %v3498_v18 = vmov 0  ;;  %3517 = vst [vmem:[#allocation9_spill] sm:$0xff] %v3516_v2  ;;  %v887_v1 = vadd.f32 %v3519_v51, %v3518_v3  ;;  %v3527_v21 = vld [vmem:[#allocation13_spill] sm:$0xff] }
 0x11b   : > { %3473 = vst [vmem:[#allocation17_spill] sm:$0xff] %v3067_v59  ;;  %v3483_v59 = vmov 0  ;;  %v3496_v16 = vsel %vm3118_vm13, 4294967295, %v3495_v16  ;;  %v987_v17 = vadd.f32 %v2609_v48, %v871_v58  ;;  %v3499_v18 = vsel %vm3126_vm14, 4294967295, %v3498_v18 }
 0x11c   : > { %v3081_v56 = vpop.f32.mrf.mxu0  ;;  %v3484_v59 = vsel %vm3083_vm9, 4294967295, %v3483_v59  ;;  %3497 = vst [vmem:[#allocation25_spill] sm:$0xff] %v3496_v16  ;;  %3500 = vst [vmem:[#allocation26_spill] sm:$0xff] %v3499_v18  ;;  %v702_v20 = vadd.f32 %v3015_v29, %v578_v32  ;;  %v2632_v44 = vpop.f32.mrf.mxu1  ;;  %v703_v25 = vadd.f32 %v3019_v33, %v581_v47  ;;  %v708_v29 = vadd.f32 %v3021_v35, %v602_v13 }
 0x11d   : > { %3485 = vst [vmem:[#allocation21_spill] sm:$0xff] %v3484_v59  ;;  %v876_v48 = vadd.f32 %v3041_v54, %v3027_v38  ;;  %v3507_v33 = vmov 0  ;;  %v1008_v35 = vsel %vm3073_vm7, %v984_v6, 0.0  ;;  %v1011_v37 = vsel %vm3077_vm8, %v987_v17, 0.0  ;;  %v3510_v38 = vld [vmem:[#allocation7_spill] sm:$0xff] }
 0x11e   : > { %v3090_v53 = vpop.f32.mrf.mxu0  ;;  %v3508_v33 = vsel %vm3157_vm1, 4294967295, %v3507_v33  ;;  %v3168_v54 = vadd.f32 %v3510_v38, %v597_v4  ;;  %v1018_v58 = vadd.f32 %v1010_v26, %v704_v19  ;;  %vm3175_vm2 = vcmp.gt.s32.totalorder %v353_v11, 0  ;;  %v1190_v9 = vpop.f32.mrf.mxu1  ;;  %v3526_v19 = vld [vmem:[#allocation8_spill] sm:$0xff] }
 0x11f   : > { %3509 = vst [vmem:[#allocation29_spill] sm:$0xff] %v3508_v33  ;;  %v3513_v8 = vsel %vm3175_vm2, 4294967295, %v3512_v8  ;;  %v1016_v13 = vadd.f32 %v1008_v35, %v702_v20  ;;  %v1019_v28 = vadd.f32 %v1011_v37, %v705_v24  ;;  %v988_v42 = vadd.f32 %v3522_v14, %v876_v48 }
 0x120   : > { %v3116_v15 = vpop.f32.mrf.mxu0  ;;  %3514 = vst [vmem:[#allocation7_spill] sm:$0xff] %v3513_v8  ;;  %v3520_v43 = vld [vmem:[#allocation15_spill] sm:$0xff]  ;;  %v3521_v30 = vld [vmem:[#allocation16_spill] sm:$0xff]  ;;  %v3523_v17 = vmov 0  ;;  %v879_v22 = vadd.f32 %v3527_v21, %v3526_v19  ;;  %v1014_v20 = vsel %vm3100_vm11, %v990_v0, 0.0  ;;  %v2633_v24 = vpop.f32.mrf.mxu1  ;;  %vm3209_vm3 = vcmp.lt.s32.totalorder %v353_v11, 7 }
 0x121   : > { %v1186_v32 = vadd.f32 %v3521_v30, %v3520_v43  ;;  %v3524_v17 = vsel %vm3195_vm5, 4294967295, %v3523_v17  ;;  %v3529_v37 = vmov 0  ;;  %v1012_v63 = vsel %vm3126_vm14, %v988_v42, 0.0  ;;  %v3533_v11 = vld [vmem:[#allocation14_spill] sm:$0xff] }
 0x122   : > { %v3134_v49 = vpop.f32.mrf.mxu0  ;;  %3525 = vst [vmem:[#allocation6_spill] sm:$0xff] %v3524_v17  ;;  %v3528_v26 = vld [vmem:[#allocation17_spill] sm:$0xff]  ;;  %v3530_v37 = vsel %vm3209_vm3, 4294967295, %v3529_v37  ;;  %v989_v51 = vadd.f32 %v3533_v11, %v879_v22  ;;  %v1191_v43 = vadd.f32 %v1190_v9, %v3090_v53  ;;  %v1193_v30 = vpop.f32.mrf.mxu1  ;;  %v1202_v14 = vadd.f32 %v2633_v24, %v3116_v15 }
 0x123   : > { %3531 = vst [vmem:[#allocation11_spill] sm:$0xff] %v3530_v37  ;;  %v1020_v42 = vadd.f32 %v1012_v63, %v3146_v46  ;;  %v1194_v22 = vadd.f32 %v1193_v30, %v3134_v49  ;;  %v3543_v30 = vld [vmem:[#allocation4_spill] sm:$0xff] }
 0x124   : > { %v2638_v31 = vpop.f32.mrf.mxu0  ;;  %v1013_v21 = vsel %vm3175_vm2, %v989_v51, 0.0 }
 0x125   : > { %v1301_v52 = vadd.f32 %v2638_v31, %v1183_v27  ;;  %v1178_v27 = vadd.f32 %v1177_v40, %v3528_v26  ;;  %v3532_v40 = vld [vmem:[#allocation12_spill] sm:$0xff] }
 0x126   : > { %v1268_v10 = vpop.f32.mrf.mxu0  ;;  %v991_v38 = vadd.f32 %v3532_v40, %v887_v1  ;;  %v1370_v40 = vld [vmem:[#allocation3 + $0x1] sm:$0xff] }
 0x127   : > { %v1325_v45 = vsel %vm3092_vm10, %v1301_v52, 0.0  ;;  %v1299_v47 = vadd.f32 %v1268_v10, %v1175_v39  ;;  %v1017_v39 = vadd.f32 %v1009_v55, %v703_v25 }
 0x128   : > { %v1333_v4 = vadd.f32 %v1325_v45, %v1018_v58  ;;  %v2639_v6 = vpop.f32.mrf.mxu0  ;;  %v1199_v58 = vadd.f32 %v2632_v44, %v3081_v56  ;;  %v1022_v44 = vadd.f32 %v1014_v20, %v708_v29 }
 0x129   : > { %v1323_v31 = vsel %vm3104_vm12, %v1299_v47, 0.0  ;;  %v1302_v52 = vadd.f32 %v2639_v6, %v1186_v32 }
 0x12a   : > { %v1348_v48 = vadd.f32 %v3192_v34, %v1333_v4  ;;  %v1331_v7 = vadd.f32 %v1323_v31, %v1016_v13  ;;  %v1271_v35 = vpop.f32.mrf.mxu0 }
 0x12b   : > { %v1326_v25 = vsel %vm3118_vm13, %v1302_v52, 0.0  ;;  %v1300_v55 = vadd.f32 %v1271_v35, %v1178_v27  ;;  %vm3534_vm13 = vcmask 64512  }
 0x12c   : > { %v1356_v0 = vmax.f32 %v1348_v48, 0.0  ;;  %v1346_v10 = vadd.f32 %v3192_v34, %v1331_v7  ;;  %v1334_v3 = vadd.f32 %v1326_v25, %v1019_v28  ;;  %v2642_v60 = vpop.f32.mrf.mxu0  ;;  %v1015_v28 = vsel %vm3153_vm0, %v991_v38, 0.0 }
 0x12d   : > { %v1324_v1 = vsel %vm3136_vm15, %v1300_v55, 0.0  ;;  %v1305_v56 = vadd.f32 %v2642_v60, %v1199_v58  ;;  %vm3535_vm15 = vmmov %vm3534_vm13  ;;  %v1023_v27 = vadd.f32 %v1015_v28, %v3149_v36  ;;  %v1021_v48 = vadd.f32 %v1013_v21, %v3168_v54 }
 0x12e   : > { %1364 = vst.msk [vmem:[#allocation3 + $0x19] sm:$0xff] %vm3534_vm13, %v1356_v0  ;;  %v1354_v32 = vmax.f32 %v1346_v10, 0.0  ;;  %v1349_v45 = vadd.f32 %v3192_v34, %v1334_v3  ;;  %v1332_v47 = vadd.f32 %v1324_v1, %v1017_v39  ;;  %v1284_v13 = vpop.f32.mrf.mxu0  ;;  %v3541_v1 = vld [vmem:[#allocation5_spill] sm:$0xff] }
 0x12f   : > { %v1329_v53 = vsel %vm3157_vm1, %v1305_v56, 0.0  ;;  %v1303_v9 = vadd.f32 %v1284_v13, %v1191_v43 }
 0x130   : > { %1362 = vst.msk [vmem:[#allocation3 + $0x9] sm:$0xff] %vm3535_vm15, %v1354_v32  ;;  %v1357_v29 = vmax.f32 %v1349_v45, 0.0  ;;  %v1347_v4 = vadd.f32 %v3192_v34, %v1332_v47  ;;  %v1337_v6 = vadd.f32 %v1329_v53, %v1022_v44  ;;  %v2643_v19 = vpop.f32.mrf.mxu0  ;;  %vm3536_vm15 = vmmov %vm3534_vm13  ;;  %v2439_v32 = vld [vmem:[%s3429_s3 + $0x18] sm:$0xf]  ;;  %v1666_v45 = vld [vmem:[%s3429_s3] sm:$0xf] }
 0x131   : > { %v1327_v15 = vsel %vm3179_vm4, %v1303_v9, 0.0  ;;  %v1306_v26 = vadd.f32 %v2643_v19, %v1202_v14 }
 0x132   : > { %1365 = vst.msk [vmem:[#allocation3 + $0x21] sm:$0xff] %vm3534_vm13, %v1357_v29  ;;  %v1355_v46 = vmax.f32 %v1347_v4, 0.0  ;;  %v1352_v31 = vadd.f32 %v3192_v34, %v1337_v6  ;;  %v1335_v52 = vadd.f32 %v1327_v15, %v1020_v42  ;;  %v1287_v39 = vpop.f32.mrf.mxu0 }
 0x133   : > { %v1330_v20 = vsel %vm3195_vm5, %v1306_v26, 0.0  ;;  %v1304_v24 = vadd.f32 %v1287_v39, %v1194_v22  ;;  %vm3537_vm5 = vmmov %vm3534_vm13  ;;  %v2445_v39 = vld [vmem:[%s3429_s3 + $0x14] sm:$0xf] }
 0x134   : > { %1363 = vst.msk [vmem:[#allocation3 + $0x11] sm:$0xff] %vm3536_vm15, %v1355_v46  ;;  %v1360_v49 = vmax.f32 %v1352_v31, 0.0  ;;  %v1350_v7 = vadd.f32 %v3192_v34, %v1335_v52  ;;  %v1338_v35 = vadd.f32 %v1330_v20, %v1023_v27  ;;  %vm3538_vm15 = vmmov %vm3537_vm5  ;;  %v2444_v20 = vld [vmem:[%s3429_s3 + $0x8] sm:$0xf] }
 0x135   : > { %v1328_v36 = vsel %vm3209_vm3, %v1304_v24, 0.0  ;;  %vm3539_vm4 = vmmov %vm3537_vm5  ;;  %v1373_v11 = vld [vmem:[#allocation3 + $0x19] sm:$0xff]  ;;  %vm3542_vm3 = vcmask 1043456  }
 0x136   : > { %1368 = vst.msk [vmem:[#allocation3 + $0x39] sm:$0xff] %vm3534_vm13, %v1360_v49  ;;  %v1358_v38 = vmax.f32 %v1350_v7, 0.0  ;;  %v1353_v58 = vadd.f32 %v3192_v34, %v1338_v35  ;;  %v1336_v25 = vadd.f32 %v1328_v36, %v1021_v48  ;;  %vm3540_vm13 = vmmov %vm3539_vm4  ;;  %v1687_v56 = vsel %vm3542_vm3, %v3541_v1, 0  ;;  %v1559_v48 = vld [vmem:[#allocation3 + $0x49] sm:$0xff]  ;;  %v1654_v7 = vld [vmem:[#allocation3] sm:$0xff] }
 0x137   : > { %v1371_v55 = vld [vmem:[#allocation3 + $0x9] sm:$0xff]  ;;  %vm3548_vm2 = vmmov %vm3539_vm4 }
 0x138   : > { %1366 = vst.msk [vmem:[#allocation3 + $0x29] sm:$0xff] %vm3537_vm5, %v1358_v38  ;;  %v1361_v54 = vmax.f32 %v1353_v58, 0.0  ;;  %v1351_v63 = vadd.f32 %v3192_v34, %v1336_v25  ;;  %v1378_v0 = vpack.c.bf16 %v1371_v55, %v1370_v40  ;;  %vm3544_vm5 = vmmov %vm3542_vm3  ;;  %v1655_v4 = vld [vmem:[#allocation3 + $0x8] sm:$0xff] }
 0x139   : > { %v1374_v3 = vld [vmem:[#allocation3 + $0x21] sm:$0xff]  ;;  %v1579_v34 = vsel %vm3544_vm5, %v3543_v30, 0  ;;  %vm3547_vm5 = vmmov %vm3542_vm3  ;;  %v1662_v38 = vpack.c.bf16 %v1655_v4, %v1654_v7 }
 0x13a   : > { %1369 = vst.msk [vmem:[#allocation3 + $0x41] sm:$0xff] %vm3538_vm15, %v1361_v54  ;;  %v1359_v10 = vmax.f32 %v1351_v63, 0.0  ;;  %2656 = vmatprep.mubr.msk.bf16.mxu0 %vm3539_vm4, %v1378_v0  ;;  %v1386_v44 = vpack.c.bf16 %v1374_v3, %v1373_v11  ;;  %vm3545_vm15 = vmmov %vm3539_vm4  ;;  %v1658_v15 = vld [vmem:[#allocation3 + $0x20] sm:$0xff]  ;;  %v2454_v63 = vld [vmem:[%s3429_s3 + $0x20] sm:$0xf] }
 0x13b   : > { %v1372_v60 = vld [vmem:[#allocation3 + $0x11] sm:$0xff] }
 0x13c   : > { %1367 = vst.msk [vmem:[#allocation3 + $0x31] sm:$0xff] %vm3540_vm13, %v1359_v10  ;;  %v1379_v51 = vpack.c.bf16 %v1373_v11, %v1372_v60  ;;  %v1385_v43 = vpack.c.bf16 %v1372_v60, %v1371_v55  ;;  %vm3546_vm13 = vmmov %vm3539_vm4  ;;  %v1656_v14 = vld [vmem:[#allocation3 + $0x10] sm:$0xff]  ;;  %v1657_v21 = vld [vmem:[#allocation3 + $0x18] sm:$0xff] }
 0x13d   : > { %v1377_v9 = vld [vmem:[#allocation3 + $0x39] sm:$0xff]  ;;  %v1668_v19 = vpack.c.bf16 %v1656_v14, %v1655_v4  ;;  %v1669_v26 = vpack.c.bf16 %v1658_v15, %v1657_v21  ;;  %v1663_v36 = vpack.c.bf16 %v1657_v21, %v1656_v14  ;;  %v1953_v10 = vld [vmem:[#allocation3 + $0xa] sm:$0xff]  ;;  %v1952_v11 = vld [vmem:[#allocation3 + $0x2] sm:$0xff] }
 0x13e   : > { %2646 = vmatprep.mubr.msk.bf16.mxu1 %vm3545_vm15, %v1385_v43  ;;  %2657 = vmatmul.mubr.msk.bf16.vlgmr.msra.gmra.mxu0 %vm3539_vm4, %v1379_v51  ;;  %vm3549_vm15 = vmmov %vm3548_vm2 }
 0x13f   : > { %2647 = vmatmul.mubr.msk.bf16.vlgmr.msra.gmra.mxu1 %vm3546_vm13, %v1386_v44  ;;  %v1375_v47 = vld [vmem:[#allocation3 + $0x29] sm:$0xff]  ;;  %2675 = vmatpush3.bf16.msra.mxu0 %v1687_v56  ;;  %vm3550_vm4 = vmmov %vm3548_vm2  ;;  %v1955_v44 = vld [vmem:[#allocation3 + $0x1a] sm:$0xff] }
 0x140   : > { %2665 = vmatpush3.bf16.msra.mxu1 %v1579_v34  ;;  %v1380_v13 = vpack.c.bf16 %v1375_v47, %v1374_v3  ;;  %2748 = vmatprep.subr.msk.bf16.mxu0 %vm3542_vm3, %v2439_v32  ;;  %vm3551_vm13 = vmmov %vm3548_vm2  ;;  %v1659_v27 = vld [vmem:[#allocation3 + $0x28] sm:$0xff]  ;;  %v1954_v3 = vld [vmem:[#allocation3 + $0x12] sm:$0xff] }
 0x141   : > { %2747 = vmatprep.subr.msk.bf16.mxu1 %vm3547_vm5, %v1666_v45  ;;  %v1384_v28 = vld [vmem:[#allocation3 + $0x41] sm:$0xff]  ;;  %vm3552_vm3 = vmmov %vm3548_vm2  ;;  %v1843_v58 = vpack.c.bf16 %v1659_v27, %v1658_v15  ;;  %v1967_v43 = vpack.c.bf16 %v1954_v3, %v1953_v10  ;;  %v1961_v34 = vpack.c.bf16 %v1955_v44, %v1954_v3 }
 0x142   : > { %2660 = vmatprep.mubr.msk.bf16.mxu0 %vm3548_vm2, %v1380_v13  ;;  %v1388_v6 = vpack.c.bf16 %v1384_v28, %v1377_v9  ;;  %vm3553_vm5 = vmmov %vm3548_vm2  ;;  %vm3554_vm2 = vcmask 1043456   ;;  %v1667_v49 = vld [vmem:[#allocation3 + $0x40] sm:$0xff]  ;;  %v1563_v40 = vpack.c.bf16 %v1559_v48, %v1384_v28  ;;  %v1841_v0 = vld [vmem:[#allocation3 + $0x48] sm:$0xff] }
 0x143   : > { %v1376_v53 = vld [vmem:[#allocation3 + $0x31] sm:$0xff]  ;;  %v1767_v31 = vsel %vm3554_vm2, %v1666_v45, 0  ;;  %vm3555_vm1 = vmmov %vm3552_vm3  ;;  %v1845_v60 = vpack.c.bf16 %v1841_v0, %v1667_v49  ;;  %v1956_v1 = vld [vmem:[#allocation3 + $0x22] sm:$0xff] }
 0x144   : > { %v1387_v42 = vpack.c.bf16 %v1376_v53, %v1375_v47  ;;  %v1381_v29 = vpack.c.bf16 %v1377_v9, %v1376_v53  ;;  %v1660_v22 = vld [vmem:[#allocation3 + $0x30] sm:$0xff]  ;;  %vm3556_vm0 = vmmov %vm3554_vm2  ;;  %v1661_v24 = vld [vmem:[#allocation3 + $0x38] sm:$0xff] }
 0x145   : > { %v1670_v46 = vpack.c.bf16 %v1660_v22, %v1659_v27  ;;  %v1861_v52 = vsel %vm3556_vm0, %v2439_v32, 0  ;;  %v1671_v35 = vpack.c.bf16 %v1667_v49, %v1661_v24  ;;  %vm3562_vm2 = vmmov %vm3552_vm3  ;;  %v1844_v25 = vpack.c.bf16 %v1661_v24, %v1660_v22  ;;  %v1957_v56 = vld [vmem:[#allocation3 + $0x2a] sm:$0xff]  ;;  %v1958_v30 = vld [vmem:[#allocation3 + $0x32] sm:$0xff] }
 0x146   : > { %2650 = vmatprep.mubr.msk.bf16.mxu1 %vm3549_vm15, %v1387_v42  ;;  %2661 = vmatmul.mubr.msk.bf16.gmra.mxu0 %vm3550_vm4, %v1381_v29  ;;  %vm3557_vm15 = vmmov %vm3555_vm1  ;;  %v1968_v32 = vpack.c.bf16 %v1956_v1, %v1955_v44  ;;  %v1962_v45 = vpack.c.bf16 %v1957_v56, %v1956_v1  ;;  %v1959_v28 = vld [vmem:[#allocation3 + $0x3a] sm:$0xff]  ;;  %v1966_v14 = vld [vmem:[#allocation3 + $0x42] sm:$0xff] }
 0x147   : > { %2651 = vmatmul.mubr.msk.bf16.gmra.mxu1 %vm3551_vm13, %v1388_v6  ;;  %2676 = vmatprep.mubr.msk.bf16.mxu0 %vm3552_vm3, %v1668_v19  ;;  %vm3558_vm4 = vmmov %vm3555_vm1  ;;  %v1963_v53 = vpack.c.bf16 %v1959_v28, %v1958_v30  ;;  %v1970_v9 = vpack.c.bf16 %v1966_v14, %v1959_v28  ;;  %v2140_v42 = vld [vmem:[#allocation3 + $0x4a] sm:$0xff] }
 0x148   : > { %2666 = vmatprep.mubr.msk.bf16.mxu1 %vm3553_vm5, %v1379_v51  ;;  %vm3559_vm13 = vmmov %vm3555_vm1  ;;  %v1960_v51 = vpack.c.bf16 %v1953_v10, %v1952_v11 }
 0x149   : > { %vm3561_vm5 = vmmov %vm3552_vm3 }
 0x14e   : > { %2677 = vmatmul.mubr.msk.bf16.vlgmr.msra.gmra.mxu0 %vm3555_vm1, %v1669_v26  ;;  %vm3560_vm1 = vmmov %vm3556_vm0 }
 0x14f   : > { %2667 = vmatmul.mubr.msk.bf16.vlgmr.msra.gmra.mxu1 %vm3557_vm15, %v1380_v13  ;;  %2680 = vmatprep.mubr.msk.bf16.mxu0 %vm3558_vm4, %v1670_v46  ;;  %vm3563_vm15 = vmmov %vm3562_vm2  ;;  %v1969_v13 = vpack.c.bf16 %v1958_v30, %v1957_v56 }
 0x150   : > { %2685 = vmatpush3.bf16.msra.mxu1 %v1767_v31  ;;  %2670 = vmatprep.mubr.msk.bf16.mxu1 %vm3559_vm13, %v1381_v29  ;;  %vm3564_vm4 = vmmov %vm3556_vm0  ;;  %v2144_v29 = vpack.c.bf16 %v2140_v42, %v1966_v14 }
 0x151   : > { %2695 = vmatpush3.bf16.msra.mxu0 %v1861_v52  ;;  %2749 = vmatprep.subr.msk.bf16.mxu1 %vm3560_vm1, %v2445_v39  ;;  %v1986_v55 = vsel %vm3564_vm4, %v2445_v39, 0  ;;  %vm3565_vm13 = vmmov %vm3562_vm2 }
 0x152   : > { %2750 = vmatprep.subr.msk.bf16.mxu0 %vm3556_vm0, %v2444_v20  ;;  %vm3566_vm1 = vmmov %vm3556_vm0 }
 0x153   : > { %v2066_v54 = vsel %vm3566_vm1, %v2444_v20, 0  ;;  %vm3567_vm0 = vmmov %vm3562_vm2 }
 0x154   : > { %vm3572_vm4 = vmmov %vm3567_vm0 }
 0x156   : > { %2681 = vmatmul.mubr.msk.bf16.gmra.mxu0 %vm3552_vm3, %v1671_v35  ;;  %vm3568_vm3 = vmmov %vm3567_vm0 }
 0x157   : > { %2671 = vmatmul.mubr.msk.bf16.gmra.mxu1 %vm3561_vm5, %v1563_v40  ;;  %2696 = vmatprep.mubr.msk.bf16.mxu0 %vm3562_vm2, %v1663_v36  ;;  %vm3569_vm5 = vmmov %vm3567_vm0 }
 0x158   : > { %2686 = vmatprep.mubr.msk.bf16.mxu1 %vm3563_vm15, %v1662_v38  ;;  %vm3570_vm2 = vmmov %vm3566_vm1 }
 0x159   : > { %vm3571_vm15 = vmmov %vm3567_vm0 }
 0x15a   : > { %vm3574_vm1 = vmmov %vm3567_vm0 }
 0x15e   : > { %2697 = vmatmul.mubr.msk.bf16.vlgmr.msra.gmra.mxu0 %vm3565_vm13, %v1843_v58  ;;  %vm3573_vm13 = vmmov %vm3567_vm0 }
 0x15f   : > { %2687 = vmatmul.mubr.msk.bf16.vlgmr.msra.gmra.mxu1 %vm3567_vm0, %v1663_v36  ;;  %2700 = vmatprep.mubr.msk.bf16.mxu0 %vm3568_vm3, %v1844_v25  ;;  %vm3575_vm0 = vmmov %vm3570_vm2 }
 0x160   : > { %2705 = vmatpush3.bf16.msra.mxu1 %v1986_v55  ;;  %2690 = vmatprep.mubr.msk.bf16.mxu1 %vm3569_vm5, %v1843_v58  ;;  %v2160_v47 = vsel %vm3575_vm0, %v2454_v63, 0  ;;  %vm3576_vm3 = vmmov %vm3574_vm1 }
 0x161   : > { %2715 = vmatpush3.bf16.msra.mxu0 %v2066_v54  ;;  %2751 = vmatprep.subr.msk.bf16.mxu1 %vm3570_vm2, %v2454_v63  ;;  %vm3577_vm5 = vmmov %vm3574_vm1 }
 0x162   : > { %vm3578_vm2 = vmmov %vm3574_vm1 }
 0x163   : > { %vm3582_vm0 = vmmov %vm3574_vm1 }
 0x166   : > { %2701 = vmatmul.mubr.msk.bf16.gmra.mxu0 %vm3571_vm15, %v1845_v60  ;;  %vm3579_vm15 = vmmov %vm3574_vm1 }
 0x167   : > { %2691 = vmatmul.mubr.msk.bf16.gmra.mxu1 %vm3572_vm4, %v1844_v25  ;;  %2716 = vmatprep.mubr.msk.bf16.mxu0 %vm3573_vm13, %v1960_v51  ;;  %vm3580_vm4 = vmmov %vm3574_vm1 }
 0x168   : > { %2706 = vmatprep.mubr.msk.bf16.mxu1 %vm3574_vm1, %v1967_v43  ;;  %vm3581_vm13 = vmmov %vm3574_vm1 }
 0x16e   : > { %2717 = vmatmul.mubr.msk.bf16.vlgmr.msra.gmra.mxu0 %vm3576_vm3, %v1961_v34  ;;  %vm3583_vm3 = vmmov %vm3582_vm0 }
 0x16f   : > { %2707 = vmatmul.mubr.msk.bf16.vlgmr.msra.gmra.mxu1 %vm3577_vm5, %v1968_v32  ;;  %2720 = vmatprep.mubr.msk.bf16.mxu0 %vm3578_vm2, %v1962_v45  ;;  %vm3584_vm5 = vmmov %vm3582_vm0 }
 0x170   : > { %2725 = vmatpush3.bf16.msra.mxu1 %v2160_v47  ;;  %2710 = vmatprep.mubr.msk.bf16.mxu1 %vm3579_vm15, %v1969_v13  ;;  %vm3621_vm2 = vmmov %vm3582_vm0 }
 0x176   : > { %2721 = vmatmul.mubr.msk.bf16.gmra.mxu0 %vm3580_vm4, %v1963_v53  ;;  %vm3624_vm4 = vmmov %vm3582_vm0 }
 0x177   : > { %2711 = vmatmul.mubr.msk.bf16.gmra.mxu1 %vm3581_vm13, %v1970_v9 }
 0x178   : > { %2726 = vmatprep.mubr.msk.bf16.mxu1 %vm3574_vm1, %v1961_v34  ;;  %vm3627_vm1 = vmmov %vm3582_vm0 }
 0x17f   : > { %2727 = vmatmul.mubr.msk.bf16.vlgmr.msra.gmra.mxu1 %vm3582_vm0, %v1962_v45 }
 0x180   : > { %2730 = vmatprep.mubr.msk.bf16.mxu1 %vm3583_vm3, %v1963_v53  ;;  %vm3628_vm3 = vmmov %vm3582_vm0 }
 0x187   : > { %2731 = vmatmul.mubr.msk.bf16.gmra.mxu1 %vm3584_vm5, %v2144_v29  ;;  %vm3629_vm5 = vmmov %vm3582_vm0 }
 0x1fe   : > { %v2658_v4 = vpop.f32.mrf.mxu0 }
 0x1ff   : > { %v2648_v6 = vpop.f32.mrf.mxu1 }
 0x200   : > { %v1521_v19 = vpop.f32.mrf.mxu0 }
 0x201   : > { %v1441_v21 = vpop.f32.mrf.mxu1 }
 0x202   : > { %v2659_v22 = vpop.f32.mrf.mxu0 }
 0x203   : > { %v2649_v15 = vpop.f32.mrf.mxu1 }
 0x204   : > { %v1524_v26 = vpop.f32.mrf.mxu0 }
 0x205   : > { %v1444_v27 = vpop.f32.mrf.mxu1 }
 0x206   : > { %v2662_v46 = vpop.f32.mrf.mxu0  ;;  %v1525_v62 = vadd.f32 %v1524_v26, %v1444_v27 }
 0x207   : > { %v2652_v31 = vpop.f32.mrf.mxu1 }
 0x208   : > { %v1537_v52 = vpop.f32.mrf.mxu0  ;;  %v1546_v61 = vadd.f32 %v2662_v46, %v2652_v31 }
 0x209   : > { %v1457_v39 = vpop.f32.mrf.mxu1 }
 0x20a   : > { %v2663_v20 = vpop.f32.mrf.mxu0  ;;  %v1538_v57 = vadd.f32 %v1537_v52, %v1457_v39 }
 0x20b   : > { %v2653_v24 = vpop.f32.mrf.mxu1 }
 0x20c   : > { %v1540_v48 = vpop.f32.mrf.mxu0 }
 0x20d   : > { %v1460_v49 = vpop.f32.mrf.mxu1 }
 0x20e   : > { %v2678_v7 = vpop.f32.mrf.mxu0 }
 0x20f   : > { %v2668_v35 = vpop.f32.mrf.mxu1 }
 0x210   : > { %v1723_v36 = vpop.f32.mrf.mxu0 }
 0x211   : > { %v1615_v40 = vpop.f32.mrf.mxu1 }
 0x212   : > { %v2679_v38 = vpop.f32.mrf.mxu0 }
 0x213   : > { %v2669_v58 = vpop.f32.mrf.mxu1 }
 0x214   : > { %v1726_v25 = vpop.f32.mrf.mxu0 }
 0x215   : > { %v1618_v55 = vpop.f32.mrf.mxu1 }
 0x216   : > { %v2682_v54 = vpop.f32.mrf.mxu0 }
 0x217   : > { %v2672_v63 = vpop.f32.mrf.mxu1 }
 0x218   : > { %v1739_v0 = vpop.f32.mrf.mxu0 }
 0x219   : > { %v1631_v10 = vpop.f32.mrf.mxu1 }
 0x21a   : > { %v3320_v3 = vpop.f32.mrf.mxu0  ;;  %v3340_v26 = vadd.f32 %v1631_v10, %v1538_v57 }
 0x21b   : > { %3585 = vst [vmem:[#allocation15_spill] sm:$0xff] %v3320_v3  ;;  %v2673_v60 = vpop.f32.mrf.mxu1  ;;  %v1530_v3 = vadd.f32 %v2658_v4, %v2648_v6 }
 0x21c   : > { %v3322_v11 = vpop.f32.mrf.mxu0 }
 0x21d   : > { %3586 = vst [vmem:[#allocation16_spill] sm:$0xff] %v3322_v11  ;;  %v1634_v51 = vpop.f32.mrf.mxu1 }
 0x21e   : > { %v2698_v43 = vpop.f32.mrf.mxu0 }
 0x21f   : > { %v2688_v1 = vpop.f32.mrf.mxu1 }
 0x220   : > { %v1897_v56 = vpop.f32.mrf.mxu0  ;;  %v1812_v18 = vadd.f32 %v2688_v1, %v2678_v7  ;;  %v1549_v7 = vadd.f32 %v2663_v20, %v2653_v24 }
 0x221   : > { %v1803_v44 = vpop.f32.mrf.mxu1 }
 0x222   : > { %v2699_v30 = vpop.f32.mrf.mxu0  ;;  %v1804_v5 = vadd.f32 %v1803_v44, %v1723_v36  ;;  %v1930_v59 = vadd.f32 %v2698_v43, %v1812_v18  ;;  %v3342_v27 = vadd.f32 %v2673_v60, %v1549_v7 }
 0x223   : > { %v2689_v34 = vpop.f32.mrf.mxu1 }
 0x224   : > { %v1900_v32 = vpop.f32.mrf.mxu0  ;;  %v1815_v12 = vadd.f32 %v2689_v34, %v2679_v38  ;;  %v1928_v36 = vadd.f32 %v1897_v56, %v1804_v5  ;;  %v1648_v34 = vadd.f32 %v2668_v35, %v1530_v3  ;;  %v3598_v3 = vld [vmem:[#allocation16_spill] sm:$0xff] }
 0x225   : > { %v1806_v45 = vpop.f32.mrf.mxu1 }
 0x226   : > { %v2702_v47 = vpop.f32.mrf.mxu0  ;;  %v1807_v11 = vadd.f32 %v1806_v45, %v1726_v25  ;;  %v1931_v44 = vadd.f32 %v2699_v30, %v1815_v12  ;;  %v1936_v31 = vsel %vm3073_vm7, %v1928_v36, 0.0 }
 0x227   : > { %v2692_v13 = vpop.f32.mrf.mxu1 }
 0x228   : > { %v1913_v28 = vpop.f32.mrf.mxu0  ;;  %v1929_v25 = vadd.f32 %v1900_v32, %v1807_v11  ;;  %v1828_v45 = vadd.f32 %v2692_v13, %v2682_v54  ;;  %v1939_v39 = vsel %vm3077_vm8, %v1931_v44, 0.0  ;;  %vm3611_vm8 = vmmov %vm3582_vm0 }
 0x229   : > { %v1819_v14 = vpop.f32.mrf.mxu1 }
 0x22a   : > { %v3324_v53 = vpop.f32.mrf.mxu0  ;;  %v1820_v5 = vadd.f32 %v1819_v14, %v1739_v0  ;;  %v1934_v57 = vadd.f32 %v2702_v47, %v1828_v45 }
 0x22b   : > { %3587 = vst [vmem:[#allocation10_spill] sm:$0xff] %v3324_v53  ;;  %v2693_v9 = vpop.f32.mrf.mxu1 }
 0x22c   : > { %v3326_v42 = vpop.f32.mrf.mxu0  ;;  %v1942_v30 = vsel %vm3100_vm11, %v1934_v57, 0.0  ;;  %vm3616_vm11 = vmmov %vm3582_vm0 }
 0x22d   : > { %3588 = vst [vmem:[#allocation8_spill] sm:$0xff] %v3326_v42  ;;  %v3328_v29 = vpop.f32.mrf.mxu1  ;;  %v1522_v42 = vadd.f32 %v1521_v19, %v1441_v21  ;;  %v1647_v19 = vadd.f32 %v1618_v55, %v1525_v62  ;;  %v1938_v21 = vsel %vm3069_vm6, %v1930_v59, 0.0  ;;  %v3612_v59 = vld [vmem:[#allocation28_spill] sm:$0xff] }
 0x22e   : > { %3589 = vst [vmem:[#allocation13_spill] sm:$0xff] %v3328_v29  ;;  %v2718_v37 = vpop.f32.mrf.mxu0  ;;  %v1533_v29 = vadd.f32 %v2659_v22, %v2649_v15  ;;  %v1652_v15 = vadd.f32 %v2672_v63, %v1546_v61  ;;  %v1937_v61 = vsel %vm3083_vm9, %v1929_v25, 0.0  ;;  %vm3613_vm9 = vnez %v3612_v59 }
 0x22f   : > { %v2708_v17 = vpop.f32.mrf.mxu1  ;;  %v1646_v38 = vadd.f32 %v1615_v40, %v1522_v42 }
 0x230   : > { %v2102_v2 = vpop.f32.mrf.mxu0  ;;  %v1649_v6 = vadd.f32 %v2669_v58, %v1533_v29  ;;  %v2111_v22 = vadd.f32 %v2718_v37, %v2708_v17  ;;  %v1946_v37 = vadd.f32 %v1938_v21, %v1648_v34 }
 0x231   : > { %v2022_v8 = vpop.f32.mrf.mxu1  ;;  %v1944_v63 = vadd.f32 %v1936_v31, %v1646_v38 }
 0x232   : > { %v2719_v50 = vpop.f32.mrf.mxu0  ;;  %v2103_v20 = vadd.f32 %v2102_v2, %v2022_v8  ;;  %v3358_v8 = vld [vmem:[%s3430_s4] ss:$0 sm:$0xff]  ;;  %v1932_v2 = vadd.f32 %v1913_v28, %v1820_v5  ;;  %v1947_v0 = vadd.f32 %v1939_v39, %v1649_v6  ;;  %v1945_v28 = vadd.f32 %v1937_v61, %v1647_v19 }
 0x233   : > { %v2709_v33 = vpop.f32.mrf.mxu1 }
 0x234   : > { %v2105_v41 = vpop.f32.mrf.mxu0  ;;  %v2114_v40 = vadd.f32 %v2719_v50, %v2709_v33  ;;  %v1940_v34 = vsel %vm3126_vm14, %v1932_v2, 0.0  ;;  %v3607_v19 = vld [vmem:[#allocation8_spill] sm:$0xff] }
 0x235   : > { %v2025_v23 = vpop.f32.mrf.mxu1  ;;  %v3599_v60 = vld [vmem:[#allocation13_spill] sm:$0xff] }
 0x236   : > { %v1823_v11 = vadd.f32 %v3599_v60, %v3598_v3 }
 0x237   : > { %v3330_v16 = vpop.f32.mrf.mxu1 }
 0x238   : > { %3590 = vst [vmem:[#allocation17_spill] sm:$0xff] %v3330_v16  ;;  %v1541_v16 = vadd.f32 %v1540_v48, %v1460_v49  ;;  %v3596_v49 = vld [vmem:[#allocation15_spill] sm:$0xff] }
 0x239   : > { %v3332_v53 = vpop.f32.mrf.mxu1  ;;  %v1831_v35 = vadd.f32 %v2693_v9, %v3596_v49  ;;  %v3602_v9 = vld [vmem:[#allocation10_spill] sm:$0xff] }
 0x23a   : > { %3591 = vst [vmem:[#allocation12_spill] sm:$0xff] %v3332_v53  ;;  %v2722_v53 = vpop.f32.mrf.mxu0  ;;  %v3348_v24 = vadd.f32 %v1634_v51, %v1541_v16  ;;  %v2106_v51 = vadd.f32 %v2105_v41, %v2025_v23  ;;  %v3604_v41 = vld [vmem:[#allocation25_spill] sm:$0xff] }
 0x23b   : > { %v3334_v1 = vpop.f32.mrf.mxu1  ;;  %v1935_v42 = vadd.f32 %v3602_v9, %v1831_v35  ;;  %vm3605_vm6 = vnez %v3604_v41 }
 0x23c   : > { %v2118_v17 = vpop.f32.mrf.mxu0 }
 0x23d   : > { %v3336_v4 = vpop.f32.mrf.mxu1  ;;  %v1943_v61 = vsel %vm3613_vm9, %v1935_v42, 0.0 }
 0x23e   : > { %v2723_v32 = vpop.f32.mrf.mxu0 }
 0x23f   : > { %v2728_v12 = vpop.f32.mrf.mxu1  ;;  %v3603_v29 = vld [vmem:[#allocation17_spill] sm:$0xff]  ;;  %v2130_v57 = vadd.f32 %v2723_v32, %v3334_v1 }
 0x240   : > { %v2229_v62 = vadd.f32 %v2728_v12, %v2111_v22  ;;  %v2127_v7 = vadd.f32 %v2722_v53, %v3603_v29  ;;  %v1933_v53 = vadd.f32 %v3607_v19, %v1823_v11  ;;  %v3609_v22 = vld [vmem:[#allocation27_spill] sm:$0xff]  ;;  %v2121_v46 = vpop.f32.mrf.mxu0  ;;  %v3619_v1 = vld [vmem:[#allocation9_spill] sm:$0xff]  ;;  %v3622_v11 = vld [vmem:[#allocation6_spill] sm:$0xff] }
 0x241   : > { %v2196_v48 = vpop.f32.mrf.mxu1  ;;  %v3608_v18 = vld [vmem:[#allocation12_spill] sm:$0xff]  ;;  %vm3610_vm7 = vnez %v3609_v22  ;;  %v2122_v2 = vadd.f32 %v2121_v46, %v3336_v4  ;;  %vm3620_vm14 = vnez %v3619_v1  ;;  %vm3623_vm15 = vnez %v3622_v11 }
 0x242   : > { %v2237_v55 = vsel %vm3092_vm10, %v2229_v62, 0.0  ;;  %v2227_v16 = vadd.f32 %v2196_v48, %v2103_v20  ;;  %v2119_v21 = vadd.f32 %v2118_v17, %v3608_v18  ;;  %v1950_v20 = vadd.f32 %v1942_v30, %v1652_v15  ;;  %v3614_v17 = vld [vmem:[#allocation29_spill] sm:$0xff]  ;;  %v3625_v30 = vld [vmem:[#allocation11_spill] sm:$0xff] }
 0x243   : > { %v2245_v54 = vadd.f32 %v2237_v55, %v1946_v37  ;;  %v2729_v10 = vpop.f32.mrf.mxu1  ;;  %vm3615_vm10 = vnez %v3614_v17  ;;  %v1948_v15 = vadd.f32 %v1940_v34, %v3340_v26  ;;  %v3617_v55 = vld [vmem:[#allocation7_spill] sm:$0xff]  ;;  %v1951_v26 = vadd.f32 %v1943_v61, %v3342_v27 }
 0x244   : > { %v2235_v33 = vsel %vm3104_vm12, %v2227_v16, 0.0  ;;  %v2230_v43 = vadd.f32 %v2729_v10, %v2114_v40  ;;  %vm3618_vm12 = vnez %v3617_v55  ;;  %vm3626_vm13 = vnez %v3625_v30 }
 0x245   : > { %v2260_v47 = vadd.f32 %v3358_v8, %v2245_v54  ;;  %v2243_v13 = vadd.f32 %v2235_v33, %v1944_v63  ;;  %v2199_v14 = vpop.f32.mrf.mxu1  ;;  %v1941_v16 = vsel %vm3618_vm12, %v1933_v53, 0.0 }
 0x246   : > { %v2238_v23 = vsel %vm3605_vm6, %v2230_v43, 0.0  ;;  %v2228_v36 = vadd.f32 %v2199_v14, %v2106_v51  ;;  %v1949_v56 = vadd.f32 %v1941_v16, %v3348_v24 }
 0x247   : > { %v2268_v38 = vmax.f32 %v2260_v47, 0.0  ;;  %v2258_v25 = vadd.f32 %v3358_v8, %v2243_v13  ;;  %v2246_v45 = vadd.f32 %v2238_v23, %v1947_v0  ;;  %v2732_v6 = vpop.f32.mrf.mxu1 }
 0x248   : > { %v2236_v5 = vsel %vm3610_vm7, %v2228_v36, 0.0  ;;  %v2233_v12 = vadd.f32 %v2732_v6, %v2127_v7 }
 0x249   : > { %2276 = vst.msk [vmem:[%s3373_s20 + $0x10] sm:$0xff] %vm3611_vm8, %v2268_v38  ;;  %v2266_v31 = vmax.f32 %v2258_v25, 0.0  ;;  %v2261_v52 = vadd.f32 %v3358_v8, %v2246_v45  ;;  %v2244_v39 = vadd.f32 %v2236_v5, %v1945_v28  ;;  %v2212_v62 = vpop.f32.mrf.mxu1 }
 0x24a   : > { %v2241_v37 = vsel %vm3615_vm10, %v2233_v12, 0.0  ;;  %v2231_v48 = vadd.f32 %v2212_v62, %v2119_v21 }
 0x24b   : > { %2274 = vst.msk [vmem:[%s3373_s20] sm:$0xff] %vm3616_vm11, %v2266_v31  ;;  %v2269_v49 = vmax.f32 %v2261_v52, 0.0  ;;  %v2259_v35 = vadd.f32 %v3358_v8, %v2244_v39  ;;  %v2249_v40 = vadd.f32 %v2241_v37, %v1950_v20  ;;  %v2733_v58 = vpop.f32.mrf.mxu1 }
 0x24c   : > { %v2239_v54 = vsel %vm3620_vm14, %v2231_v48, 0.0  ;;  %v2234_v63 = vadd.f32 %v2733_v58, %v2130_v57 }
 0x24d   : > { %2277 = vst.msk [vmem:[%s3373_s20 + $0x18] sm:$0xff] %vm3621_vm2, %v2269_v49  ;;  %v2267_v0 = vmax.f32 %v2259_v35, 0.0  ;;  %v2264_v10 = vadd.f32 %v3358_v8, %v2249_v40  ;;  %v2247_v3 = vadd.f32 %v2239_v54, %v1948_v15  ;;  %v2215_v60 = vpop.f32.mrf.mxu1 }
 0x24e   : > { %v2242_v51 = vsel %vm3623_vm15, %v2234_v63, 0.0  ;;  %v2232_v4 = vadd.f32 %v2215_v60, %v2122_v2 }
 0x24f   : > { %2275 = vst.msk [vmem:[%s3373_s20 + $0x8] sm:$0xff] %vm3624_vm4, %v2267_v0  ;;  %v2272_v50 = vmax.f32 %v2264_v10, 0.0  ;;  %v2262_v33 = vadd.f32 %v3358_v8, %v2247_v3  ;;  %v2250_v43 = vadd.f32 %v2242_v51, %v1951_v26 }
 0x250   : > { %v2240_v32 = vsel %vm3626_vm13, %v2232_v4, 0.0 }
 0x251   : > { %2280 = vst.msk [vmem:[%s3373_s20 + $0x30] sm:$0xff] %vm3627_vm1, %v2272_v50  ;;  %v2270_v27 = vmax.f32 %v2262_v33, 0.0  ;;  %v2265_v47 = vadd.f32 %v3358_v8, %v2250_v43  ;;  %v2248_v13 = vadd.f32 %v2240_v32, %v1949_v56 }
 0x253   : > { %2278 = vst.msk [vmem:[%s3373_s20 + $0x20] sm:$0xff] %vm3582_vm0, %v2270_v27  ;;  %v2273_v28 = vmax.f32 %v2265_v47, 0.0  ;;  %v2263_v14 = vadd.f32 %v3358_v8, %v2248_v13 }
 0x255   : > { %2281 = vst.msk [vmem:[%s3373_s20 + $0x38] sm:$0xff] %vm3628_vm3, %v2273_v28  ;;  %v2271_v9 = vmax.f32 %v2263_v14, 0.0 }
 0x257   : > { %2279 = vst.msk [vmem:[%s3373_s20 + $0x28] sm:$0xff] %vm3629_vm5, %v2271_v9 }
 0x258 PF: > { %s15_s18 = sadd.s32 1, %s2767_s18  }
 0x259   : > { %p12_p4 = scmp.ge.s32.totalorder %s15_s18, 4  }
 0x25b   :  { %14 = sbr.rel (!%p12_p4) target bundleno = 1 (0x1), region = 89 }

</bundles_post_ra>
